<compile_context>
chip_gen: v7x
topology: tpu7x:2x2x1
jax: 0.10.0
libtpu: 0.0.40
codegen_flags: <defaults>
</compile_context>

<pallas_src>
import functools

import jax
import jax.numpy as jnp
from jax.experimental import pallas as pl
from jax.experimental.pallas import tpu as pltpu


def _round_up(n: int, k: int) -> int:
    return (n + k - 1) // k * k


def _pick_f_tile(F: int, want: int, align: int = 128) -> int:
    """Largest multiple of `align` that divides F and is <= want (fallbacks)."""
    best = None
    t = align
    while t <= F:
        if F % t == 0:
            if t <= want:
                best = t
            elif best is None:
                best = t  # smallest aligned divisor if none fits under `want`
                break
        t += align
    return best if best is not None else F


def prepare_ffn_weights(w1, w3, w2, *, tf):
    """One-time weight layout prep (outside the per-call hot path).

    w1, w3: [F, D], w2: [D, F]   (PyTorch nn.Linear [out, in] layout)
    Returns:
      w13: [D, 2F]  -- per F-tile of width tf, columns are [w1 slab | w3 slab]
      w2t: [F, D]
    """
    F_, D = w1.shape
    assert F_ % tf == 0, "tf must divide intermediate_size"
    nf = F_ // tf
    w1t = w1.T.reshape(D, nf, tf)
    w3t = w3.T.reshape(D, nf, tf)
    w13 = jnp.stack([w1t, w3t], axis=2).reshape(D, 2 * F_)
    w2t = w2.T
    return w13, w2t


def _ffn_kernel(x_ref, w13_ref, w2_ref, o_ref, acc_ref, *, tf):
    f = pl.program_id(1)

    @pl.when(f == 0)
    def _init():
        acc_ref[...] = jnp.zeros_like(acc_ref)

    x = x_ref[...]                                                     # [tm, D]
    # Fused up-projection: one wide MXU matmul producing [h1 | h3].
    h = jnp.dot(x, w13_ref[...], preferred_element_type=jnp.float32)  # [tm, 2tf]
    h1 = h[:, :tf]
    h3 = h[:, tf:]
    # SiLU gate in f32 (EUP sigmoid + VPU muls).
    gated = (h1 * jax.nn.sigmoid(h1)) * h3                             # [tm, tf]
    # Partial down-projection accumulated over F tiles.
    acc_ref[...] += jnp.dot(gated.astype(w2_ref.dtype), w2_ref[...],
                            preferred_element_type=jnp.float32)        # [tm, D]

    @pl.when(f == pl.num_programs(1) - 1)
    def _finalize():
        o_ref[...] = acc_ref[...].astype(o_ref.dtype)


def feed_forward(x, w13, w2t, *, tf, tm=256):
    """x: [B, S, D]; w13: [D, 2F] (prepared); w2t: [F, D] (prepared)."""
    B, S, D = x.shape
    F_ = w13.shape[1] // 2
    assert w13.shape == (D, 2 * F_)
    assert w2t.shape == (F_, D)
    assert F_ % tf == 0
    nf = F_ // tf

    M = B * S
    tm = min(tm, _round_up(M, 8))
    M_pad = _round_up(M, tm)

    x2d = x.reshape(M, D)
    if M_pad != M:
        x2d = jnp.pad(x2d, ((0, M_pad - M), (0, 0)))

    x_bytes = jnp.dtype(x.dtype).itemsize
    w_bytes = jnp.dtype(w13.dtype).itemsize

    # Advisory cost hint for the XLA scheduler.
    cost = pl.CostEstimate(
        flops=6 * M_pad * D * F_,               # 2 up-proj + 1 down-proj matmuls
        transcendentals=M_pad * F_,             # sigmoid
        bytes_accessed=2 * M_pad * D * x_bytes + 3 * D * F_ * w_bytes,
    )

    # VMEM budget: double-buffered blocks + f32 accumulator + live intermediates.
    vmem_need = (2 * tm * D * x_bytes            # x blocks
                 + 2 * D * 2 * tf * w_bytes      # w13 blocks
                 + 2 * tf * D * w_bytes          # w2 blocks
                 + 2 * tm * D * x_bytes          # out blocks
                 + tm * D * 4                    # f32 accumulator scratch
                 + 3 * tm * 2 * tf * 4)          # live f32 intermediates
    vmem_limit = int(min(max(2 * vmem_need, 32 * 1024 * 1024), 128 * 1024 * 1024))

    out2d = pl.pallas_call(
        functools.partial(_ffn_kernel, tf=tf),
        out_shape=jax.ShapeDtypeStruct((M_pad, D), x.dtype),
        grid_spec=pltpu.PrefetchScalarGridSpec(
            num_scalar_prefetch=0,
            grid=(M_pad // tm, nf),
            in_specs=[
                pl.BlockSpec((tm, D), lambda i, f: (i, 0)),      # x token tile
                pl.BlockSpec((D, 2 * tf), lambda i, f: (0, f)),  # [w1|w3] F-tile
                pl.BlockSpec((tf, D), lambda i, f: (f, 0)),      # w2 F-tile
            ],
            out_specs=pl.BlockSpec((tm, D), lambda i, f: (i, 0)),
            scratch_shapes=[pltpu.VMEM((tm, D), jnp.float32)],
        ),
        compiler_params=pltpu.CompilerParams(
            dimension_semantics=("parallel", "arbitrary"),
            vmem_limit_bytes=vmem_limit),
        cost_estimate=cost,
    )(x2d, w13, w2t)

    if M_pad != M:
        out2d = out2d[:M]
    return out2d.reshape(B, S, D)


def feed_forward_ref(x, w1, w3, w2):
    h1 = jnp.einsum("bsd,fd->bsf", x, w1)
    h3 = jnp.einsum("bsd,fd->bsf", x, w3)
    g = (h1 * jax.nn.sigmoid(h1)) * h3
    return jnp.einsum("bsf,df->bsd", g, w2)


if __name__ == "__main__":
    # Scaled-down synthetic config consistent with FeedForward semantics
    # (real LLaMA shapes: D=4096, F=11008; here a tile-friendly toy pair).
    B, S = 2, 64        # 128 tokens
    D = 256             # model dim
    F_ = 512            # intermediate size
    TF = _pick_f_tile(F_, want=256)   # -> 256: exercises the F-accumulation path

    key = jax.random.PRNGKey(0)
    kx, k1, k2, k3 = jax.random.split(key, 4)

    x = jax.random.normal(kx, (B, S, D), dtype=jnp.float32)
    bound1 = 1.0 / (D ** 0.5)
    bound2 = 1.0 / (F_ ** 0.5)
    w1 = jax.random.uniform(k1, (F_, D), minval=-bound1, maxval=bound1, dtype=jnp.float32)
    w3 = jax.random.uniform(k3, (F_, D), minval=-bound1, maxval=bound1, dtype=jnp.float32)
    w2 = jax.random.uniform(k2, (D, F_), minval=-bound2, maxval=bound2, dtype=jnp.float32)

    ref = feed_forward_ref(x, w1, w3, w2)

    # --- f32 path (tight numerical check) ---
    w13, w2t = prepare_ffn_weights(w1, w3, w2, tf=TF)   # one-time prep, not per-call
    out = jax.block_until_ready(feed_forward(x, w13, w2t, tf=TF, tm=256))
    assert out.shape == (B, S, D)
    assert jnp.allclose(out, ref, atol=1e-4, rtol=1e-4), "f32 mismatch vs reference"

    # --- bf16 path (MXU-native dtype; f32 accumulation inside the kernel) ---
    out_bf = jax.block_until_ready(
        feed_forward(x.astype(jnp.bfloat16),
                     w13.astype(jnp.bfloat16),
                     w2t.astype(jnp.bfloat16),
                     tf=TF, tm=256))
    rel_err = jnp.max(jnp.abs(out_bf.astype(jnp.float32) - ref)) / (
        jnp.max(jnp.abs(ref)) + 1e-9)
    assert rel_err < 0.1, f"bf16 rel err too large: {rel_err}"

    print("KERNEL_OK")
</pallas_src>

<mosaic_0001>
module attributes {stable_mosaic.version = 11 : i64} {
  func.func @_ffn_kernel(%arg0: i32, %arg1: i32, %arg2: memref<128x256xf32, #tpu.memory_space<vmem>>, %arg3: memref<256x512xf32, #tpu.memory_space<vmem>>, %arg4: memref<256x256xf32, #tpu.memory_space<vmem>>, %arg5: memref<128x256xf32, #tpu.memory_space<vmem>>, %arg6: memref<128x256xf32, #tpu.memory_space<vmem>>) attributes {dimension_semantics = [#tpu.dimension_semantics<parallel>, #tpu.dimension_semantics<arbitrary>], iteration_bounds = array<i64: 1, 2>, scalar_prefetch = 0 : i64, scratch_operands = 1 : i64, tpu.core_type = #tpu.core_type<tc>, window_params = [{transform_indices = @transform_0, window_bounds = array<i64: 128, 256>}, {transform_indices = @transform_1, window_bounds = array<i64: 256, 512>}, {transform_indices = @transform_2, window_bounds = array<i64: 256, 256>}, {transform_indices = @transform_3, window_bounds = array<i64: 128, 256>}]} {
    %c0_i32 = arith.constant 0 : i32
    %0 = arith.cmpi eq, %arg1, %c0_i32 : i32
    %1 = arith.extui %0 : i1 to i32
    %c0_i32_0 = arith.constant 0 : i32
    %2 = arith.cmpi ne, %1, %c0_i32_0 : i32
    scf.if %2 {
      %cst_13 = arith.constant 0.000000e+00 : f32
      %23 = vector.broadcast %cst_13 : f32 to vector<128x256xf32>
      %c0_14 = arith.constant 0 : index
      %c0_15 = arith.constant 0 : index
      %24 = vector.load %arg6[%c0_14, %c0_15] : memref<128x256xf32, #tpu.memory_space<vmem>>, vector<128x256xf32>
      tpu.vector_store %arg6[%c0_14, %c0_15], %23 {strides = array<i32>} : memref<128x256xf32, #tpu.memory_space<vmem>>, vector<128x256xf32>,
    } else {
    }
    %c0 = arith.constant 0 : index
    %c0_1 = arith.constant 0 : index
    %3 = vector.load %arg2[%c0, %c0_1] : memref<128x256xf32, #tpu.memory_space<vmem>>, vector<128x256xf32>
    %c0_2 = arith.constant 0 : index
    %c0_3 = arith.constant 0 : index
    %4 = vector.load %arg3[%c0_2, %c0_3] : memref<256x512xf32, #tpu.memory_space<vmem>>, vector<256x512xf32>
    %cst = arith.constant dense<0.000000e+00> : vector<128x512xf32>
    %5 = tpu.matmul %3, %4, %cst {dimension_numbers = #tpu.dot_dimension_numbers<[1], [0], [0], [1], [0, 0, 1, 1], [], []>} : vector<128x256xf32>, vector<256x512xf32>, vector<128x512xf32> -> vector<128x512xf32>
    %6 = vector.extract_strided_slice %5 {offsets = [0, 0], sizes = [128, 256], strides = [1, 1]} : vector<128x512xf32> to vector<128x256xf32>
    %7 = vector.extract_strided_slice %5 {offsets = [0, 256], sizes = [128, 256], strides = [1, 1]} : vector<128x512xf32> to vector<128x256xf32>
    %8 = arith.negf %6 : vector<128x256xf32>
    %9 = math.exp %8 : vector<128x256xf32>
    %cst_4 = arith.constant 1.000000e+00 : f32
    %10 = vector.broadcast %cst_4 : f32 to vector<128x256xf32>
    %11 = arith.addf %10, %9 : vector<128x256xf32>
    %12 = arith.divf %10, %11 : vector<128x256xf32>
    %13 = arith.mulf %6, %12 : vector<128x256xf32>
    %14 = arith.mulf %13, %7 : vector<128x256xf32>
    %c0_5 = arith.constant 0 : index
    %c0_6 = arith.constant 0 : index
    %15 = vector.load %arg6[%c0_5, %c0_6] : memref<128x256xf32, #tpu.memory_space<vmem>>, vector<128x256xf32>
    %c0_7 = arith.constant 0 : index
    %c0_8 = arith.constant 0 : index
    %16 = vector.load %arg4[%c0_7, %c0_8] : memref<256x256xf32, #tpu.memory_space<vmem>>, vector<256x256xf32>
    %cst_9 = arith.constant dense<0.000000e+00> : vector<128x256xf32>
    %17 = tpu.matmul %14, %16, %cst_9 {dimension_numbers = #tpu.dot_dimension_numbers<[1], [0], [0], [1], [0, 0, 1, 1], [], []>} : vector<128x256xf32>, vector<256x256xf32>, vector<128x256xf32> -> vector<128x256xf32>
    %18 = arith.addf %15, %17 : vector<128x256xf32>
    %c0_10 = arith.constant 0 : index
    %c0_11 = arith.constant 0 : index
    %19 = vector.load %arg6[%c0_10, %c0_11] : memref<128x256xf32, #tpu.memory_space<vmem>>, vector<128x256xf32>
    tpu.vector_store %arg6[%c0_10, %c0_11], %18 {strides = array<i32>} : memref<128x256xf32, #tpu.memory_space<vmem>>, vector<128x256xf32>,
    %c1_i32 = arith.constant 1 : i32
    %20 = arith.cmpi eq, %arg1, %c1_i32 : i32
    %21 = arith.extui %20 : i1 to i32
    %c0_i32_12 = arith.constant 0 : i32
    %22 = arith.cmpi ne, %21, %c0_i32_12 : i32
    scf.if %22 {
      %c0_13 = arith.constant 0 : index
      %c0_14 = arith.constant 0 : index
      %23 = vector.load %arg6[%c0_13, %c0_14] : memref<128x256xf32, #tpu.memory_space<vmem>>, vector<128x256xf32>
      %c0_15 = arith.constant 0 : index
      %c0_16 = arith.constant 0 : index
      %24 = vector.load %arg5[%c0_15, %c0_16] : memref<128x256xf32, #tpu.memory_space<vmem>>, vector<128x256xf32>
      tpu.vector_store %arg5[%c0_15, %c0_16], %23 {strides = array<i32>} : memref<128x256xf32, #tpu.memory_space<vmem>>, vector<128x256xf32>,
    } else {
    }
    return
  }
  func.func @transform_0(%arg0: i32, %arg1: i32) -> (i32, i32) {
    %c0_i32 = arith.constant 0 : i32
    %c0_i32_0 = arith.constant 0 : i32
    return %arg0, %c0_i32 : i32, i32
  }
  func.func @transform_1(%arg0: i32, %arg1: i32) -> (i32, i32) {
    %c0_i32 = arith.constant 0 : i32
    %c0_i32_0 = arith.constant 0 : i32
    return %c0_i32, %arg1 : i32, i32
  }
  func.func @transform_2(%arg0: i32, %arg1: i32) -> (i32, i32) {
    %c0_i32 = arith.constant 0 : i32
    %c0_i32_0 = arith.constant 0 : i32
    return %arg1, %c0_i32 : i32, i32
  }
  func.func @transform_3(%arg0: i32, %arg1: i32) -> (i32, i32) {
    %c0_i32 = arith.constant 0 : i32
    %c0_i32_0 = arith.constant 0 : i32
    return %arg0, %c0_i32 : i32, i32
  }
}

</mosaic_0001>

<bundles_post_ra>
// kernel: tpu_custom_call.1
= control target key start
LH: loop header
LB: loop body
LE: loop exit
PB: predicated region body
PF: predicated region fallthrough
CT: control target
= control target key end

     0   :  { %8 = vsyncpa [#allocation4], 0  ;;  %s2870_s0 = inlined_call_operand.hbm [shape: f32[128,256], index: 0, kind: input, shape index: {}]   ;;  %s2871_s1 = inlined_call_operand.hbm [shape: f32[256,1024], index: 1, kind: input, shape index: {}]   ;;  %s2872_s2 = inlined_call_operand.hbm [shape: f32[512,256], index: 2, kind: input, shape index: {}]   ;;  %s2873_s3 = inlined_call_operand.hbm [shape: f32[128,256], index: 3, kind: output, shape index: {}]  }
   0x1   :  { %9 = vsyncpa [#allocation7], 0 }
   0x2   :  { %11 = vsyncpa [#allocation7 + $0x1], 0 }
   0x3   :  { %12 = vsyncpa [#allocation5], 0  ;;  %s2231_s12 = smov 0   ;;  %s2233_s13 = smov 0  }
   0x4   :  { %s2235_s14 = smov 0   ;;  %s2237_s15 = smov 0  }
   0x5   :  { %s2239_s16 = smov 0   ;;  %s2241_s17 = smov 0  }
   0x6 LB: > { %s27_s18 = sadd.s32 1, %s2193_s16  ;;  %s63_s19 = sadd.s32 1, %s2185_s14  ;;  %s2197_s17 = sphi %s2241_s17, %s18_s17   ;;  %s2193_s16 = sphi %s2239_s16, %s2895_s16   ;;  %s2189_s15 = sphi %s2237_s15, %s2894_s15   ;;  %s2185_s14 = sphi %s2235_s14, %s2893_s14   ;;  %s2181_s13 = sphi %s2233_s13, %s2892_s13   ;;  %s2177_s12 = sphi %s2231_s12, %s2891_s12  }
   0x7   : > { %p28_p0 = scmp.ge.s32.totalorder %s27_s18, 2  ;;  %p70_p1 = scmp.ne.s32.totalorder %s2185_s14, %s2181_s13 }
   0x8   : > { %p71_p2 = scmp.eq.s32.totalorder %s2197_s17, 0  ;;  %p1835_p4 = scmp.lt.s32.totalorder %s2197_s17, 2 }
   0x9   : > { %s2897_s18 = smov (%p28_p0, %s27_s18), 0  ;;  %s169_s21 = sand.u32 1, %s2197_s17  }
   0xa   : > { %p72_p3 = por %p71_p2, %p70_p1  ;;  %s60_s20 = ssub.s32 %s2193_s16, %s2897_s18 }
   0xb   : > { %p61_p5 = scmp.eq.s32.totalorder %s60_s20, 0  ;;  %s171_s22 = sand.u32 1, %s2185_s14  }
   0xc   : > { %s1584_s23 = sshll.u32 %s2193_s16, 9  ;;  %s1535_s25 = sshll.u32 %s171_s22, 10 }
   0xd   : > { %s2275_s24 = scalar_select %p61_p5, %s2185_s14, %s63_s19  }
   0xe   : > { %s2282_s28 = scalar_lea.hbm %s2871_s1, %s1584_s23  ;;  %p2284_p6 = pnand %p1835_p4, %p72_p3 }
   0xf   : > { %s173_s30 = scalar_lea.vmem [#allocation6], %s1535_s25  ;;  %s2290_s5 = scalar_lea.sflag [#allocation7], %s169_s21 }
  0x10   : > { %s2880_s29 = scalar_select %p2284_p6, 1, 0 }
  0x11   : > { %s180_s4 = sshll.u32 %s173_s30, 4  ;;  %s2025_s6 = scalar_lea.hbm %s2282_s28, 16384  ;;  %s2288_s4 = int_to_ptr.vmem [resolvable:$true] %s180_s4 }
  0x12   : > { %p2026_p7 = scmp.ne.s32.totalorder %s2282_s28, %s2025_s6  ;;  %p2875_p8 = pneg %p2284_p6 }
  0x13   : > { %s2030_s9 = scalar_lea.hbm %s2871_s1, 32768  ;;  %p2031_p11 = scmp.lt.u32.totalorder %s2282_s28, %s2871_s1 }
  0x14   : > { %p2028_p9 = pnand %p2875_p8, %p2026_p7  ;;  %p2032_p12 = scmp.lt.u32.totalorder %s2030_s9, %s2025_s6 }
  0x15   : > { %p2034_p0 = scmp.lt.u32.totalorder %s2025_s6, %s2282_s28 }
  0x16   : > { %p2029_p10 = pneg %p2028_p9  ;;  %p2033_p13 = por %p2032_p12, %p2031_p11 }
  0x18   : > { %p2035_p1 = por %p2034_p0, %p2033_p13 }
  0x1a   : > { %p2036_p2 = pnand %p2035_p1, %p2029_p10 }
  0x1c   : > { %2039 = shalt.err (!%p2036_p2)
}
  0x1d   : > { %s2040_s19 = scalar_lea.vmem %s2288_s4, 16384  ;;  %s2199_s20 = smov [#allocation6]  }
  0x1e   : > { %p2041_p3 = scmp.ne.s32.totalorder %s2288_s4, %s2040_s19  ;;  %s2045_s21 = sshll.u32 %s2199_s20, 4  ;;  %s2046_s21 = int_to_ptr.vmem [resolvable:$false] %s2045_s21 }
  0x1f   : > { %s2047_s23 = scalar_lea.vmem %s2046_s21, 32768  ;;  %p2048_p7 = scmp.lt.s32.totalorder %s2288_s4, %s2046_s21 }
  0x20   : > { %p2043_p4 = pnand %p2041_p3, %p2875_p8  ;;  %p2049_p9 = scmp.lt.s32.totalorder %s2047_s23, %s2040_s19 }
  0x22   : > { %p2044_p5 = pneg %p2043_p4  ;;  %p2050_p11 = por %p2049_p9, %p2048_p7 }
  0x24   : > { %p2051_p12 = pnand %p2050_p11, %p2044_p5 }
  0x26   : > { %2054 = shalt.err (!%p2051_p12)
}
  0x27   : > { %s2200_s25 = smov 1024   ;;  %s2201_s26 = smov 512  }
  0x28   : > { %s2202_s27 = smov 32   ;;  %s2319_s30 = sadd.s32 4294967295, %s2197_s17  }
  0x29   : > { %1830 = dma.hbm_to_vmem [thread:$0]  (!%p2284_p6), %s2282_s28, 16384, %s2288_s4, %s2290_s5, %s2200_s25, %s2201_s26, %s2202_s27  }
  0x2a   : > { %p76_p10 = scmp.ne.s32.totalorder %s2181_s13, %s2177_s12  ;;  %p2874_p13 = scmp.eq.s32.totalorder %s2319_s30, 0 }
  0x2b   : > { %p1532_p0 = scmp.ge.s32.totalorder %s2197_s17, 1  ;;  %p139_p1 = scmp.lt.s32.totalorder %s2197_s17, 3 }
  0x2c   : > { %p2328_p2 = por %p2874_p13, %p76_p10  ;;  %s2203_s28 = smov [#allocation3]  }
  0x2d   : > { %p2332_p3 = pnand %p1532_p0, %p139_p1  ;;  %s155_s4 = sshll.u32 %s2203_s28, 4  ;;  %s2336_s4 = int_to_ptr.vmem [resolvable:$true] %s155_s4 }
  0x2e   : > { %s2881_s6 = scalar_select %p2328_p2, 1, 0 }
  0x2f   : > { %s2882_s7 = scalar_select %p2332_p3, 1, 0 }
  0x30   : > { %p1823_p4 = pneg %p2332_p3  ;;  %s1538_s12 = sshll.u32 %s171_s22, 9 }
  0x31   : > { %s1586_s8 = sshll.u32 %s2193_s16, 13  ;;  %s194_s20 = scalar_lea.vmem [#allocation8], %s1538_s12 }
  0x32   : > { %p2345_p5 = pnand %p1823_p4, %p2874_p13  ;;  %s2352_s19 = scalar_lea.hbm %s2872_s2, %s1586_s8 }
  0x33   : > { %s202_s21 = sshll.u32 %s194_s20, 4  ;;  %s2055_s22 = scalar_lea.hbm %s2870_s0, 4096  ;;  %s2354_s21 = int_to_ptr.vmem [resolvable:$true] %s202_s21 }
  0x34   : > { %p2056_p7 = scmp.ne.s32.totalorder %s2870_s0, %s2055_s22  ;;  %p2057_p9 = pneg %p2345_p5 }
  0x35   : > { %p2062_p10 = scmp.lt.u32.totalorder %s2055_s22, %s2870_s0 }
  0x36   : > { %p2058_p11 = pnand %p2057_p9, %p2056_p7 }
  0x38   : > { %p2059_p12 = pneg %p2058_p11 }
  0x3a   : > { %p2064_p0 = pnand %p2062_p10, %p2059_p12 }
  0x3c   : > { %2067 = shalt.err (!%p2064_p0)
}
  0x3d   : > { %s2068_s12 = scalar_lea.vmem %s2336_s4, 4096  ;;  %p2076_p8 = scmp.lt.s32.totalorder %s2336_s4, %s2336_s4 }
  0x3e   : > { %p2069_p1 = scmp.ne.s32.totalorder %s2336_s4, %s2068_s12  ;;  %p2077_p2 = scmp.lt.s32.totalorder %s2068_s12, %s2068_s12 }
  0x40   : > { %p2071_p4 = pnand %p2069_p1, %p2057_p9  ;;  %p2078_p3 = por %p2077_p2, %p2076_p8 }
  0x42   : > { %p2072_p13 = pneg %p2071_p4 }
  0x44   : > { %p2079_p6 = pnand %p2078_p3, %p2072_p13 }
  0x46   : > { %2082 = shalt.err (!%p2079_p6)
}
  0x47   : > { %s2204_s8 = smov 256   ;;  %s2205_s11 = smov 16  }
  0x48   : > { %1826 = dma.hbm_to_vmem [thread:$0]  (!%p2345_p5), %s2870_s0, 4096, %s2336_s4, [#allocation4], %s2204_s8, %s2204_s8, %s2205_s11  }
  0x49   : > { %s2083_s25 = scalar_lea.hbm %s2352_s19, 8192  ;;  %p2884_p6 = scmp.ne.s32.totalorder %s2880_s29, 0 }
  0x4a   : > { %p2084_p8 = scmp.ne.s32.totalorder %s2352_s19, %s2083_s25  ;;  %s2088_s27 = scalar_lea.hbm %s2872_s2, 16384 }
  0x4b   : > { %p2885_p13 = pneg %p2884_p6  ;;  %p2089_p7 = scmp.lt.u32.totalorder %s2352_s19, %s2872_s2 }
  0x4c   : > { %p2090_p9 = scmp.lt.u32.totalorder %s2088_s27, %s2083_s25  ;;  %p2092_p12 = scmp.lt.u32.totalorder %s2083_s25, %s2352_s19 }
  0x4d   : > { %p2086_p2 = pnand %p2084_p8, %p2885_p13 }
  0x4e   : > { %p2091_p11 = por %p2090_p9, %p2089_p7 }
  0x4f   : > { %p2087_p3 = pneg %p2086_p2 }
  0x50   : > { %p2093_p10 = por %p2092_p12, %p2091_p11 }
  0x52   : > { %p2094_p0 = pnand %p2093_p10, %p2087_p3 }
  0x54   : > { %2097 = shalt.err (!%p2094_p0)
}
  0x55   : > { %s2098_s4 = scalar_lea.vmem %s2354_s21, 8192  ;;  %p2886_p1 = pmov %p2885_p13 }
  0x56   : > { %p2099_p5 = scmp.ne.s32.totalorder %s2354_s21, %s2098_s4  ;;  %s2206_s9 = smov [#allocation8]  }
  0x57   : > { %s2103_s12 = sshll.u32 %s2206_s9, 4  ;;  %s2104_s12 = int_to_ptr.vmem [resolvable:$false] %s2103_s12 }
  0x58   : > { %p2101_p4 = pnand %p2099_p5, %p2886_p1  ;;  %s2105_s20 = scalar_lea.vmem %s2104_s12, 16384 }
  0x59   : > { %p2106_p13 = scmp.lt.s32.totalorder %s2354_s21, %s2104_s12  ;;  %p2107_p2 = scmp.lt.s32.totalorder %s2105_s20, %s2098_s4 }
  0x5a   : > { %p2102_p8 = pneg %p2101_p4 }
  0x5b   : > { %p2108_p7 = por %p2107_p2, %p2106_p13 }
  0x5d   : > { %p2109_p9 = pnand %p2108_p7, %p2102_p8 }
  0x5f   : > { %2112 = shalt.err (!%p2109_p9)
}
  0x60   : > { %1833 = dma.hbm_to_vmem [thread:$0]  (!%p2884_p6), %s2352_s19, 8192, %s2354_s21, %s2290_s5, %s2204_s8, %s2204_s8, %s2205_s11  }
  0x61   : > { %p2887_p3 = scmp.ne.s32.totalorder %s2882_s7, 0 }
  0x62   : > { %p2888_p11 = scmp.eq.s32.totalorder (!%p2887_p3), %s2319_s30, 0 }
  0x63   : > { %214 = sbr.rel (%p2887_p3) target bundleno = 755 (0x2f3), region = 32 }
  0x6a   : > { %2164 = dma.done.wait (%p2888_p11), [#allocation4], 4096   ;;  %p2889_p12 = pmov %p2888_p11 }
  0x6b   : > { %s220_s29 = sand.u32 1, %s2319_s30   ;;  %s222_s23 = sand.u32 1, %s2181_s13  }
  0x6c   : > { %2166 = vsyncadd (%p2889_p12), [#allocation4], 4294963200  ;;  %s1544_s25 = sshll.u32 %s222_s23, 10  ;;  %s221_s22 = scalar_lea.sflag [#allocation7], %s220_s29 }
  0x6d   : > { %s2415_s26 = scalar_lea.vmem [#allocation6], %s1544_s25  ;;  %p2890_p10 = scmp.ne.s32.totalorder %s2881_s6, 0 }
  0x6f   : > { %2168 = dma.done.wait (%p2890_p10), %s221_s22, 24576  }
  0x70   : > { %2170 = vsyncadd (%p2890_p10), %s221_s22, 4294942720  ;;  %s1545_s5 = sshll.u32 %s222_s23, 9  ;;  %p1546_p6 = scmp.ne.s32.totalorder %s2189_s15, 0 }
  0x71   : > { %s2421_s7 = scalar_lea.vmem [#allocation8], %s1545_s5  ;;  %v2207_v0 = vmov (!%p1546_p6), 0.0  }
  0x72   : > { %263 = sbr.rel (%p1546_p6) target bundleno = 130 (0x82), region = 48  ;;  %264 = vst [vmem:[#allocation2] sm:$0xff] (!%p1546_p6), %v2207_v0  ;;  %265 = vst [vmem:[#allocation2 + $0x8] sm:$0xff] (!%p1546_p6), %v2207_v0 }
  0x73   : > { %266 = vst [vmem:[#allocation2 + $0x10] sm:$0xff] (!%p1546_p6), %v2207_v0  ;;  %267 = vst [vmem:[#allocation2 + $0x18] sm:$0xff] (!%p1546_p6), %v2207_v0 }
  0x74   : > { %268 = vst [vmem:[#allocation2 + $0x20] sm:$0xff] (!%p1546_p6), %v2207_v0  ;;  %269 = vst [vmem:[#allocation2 + $0x28] sm:$0xff] (!%p1546_p6), %v2207_v0 }
  0x75   : > { %270 = vst [vmem:[#allocation2 + $0x30] sm:$0xff] (!%p1546_p6), %v2207_v0  ;;  %271 = vst [vmem:[#allocation2 + $0x38] sm:$0xff] (!%p1546_p6), %v2207_v0 }
  0x76   : > { %272 = vst [vmem:[#allocation2 + $0x40] sm:$0xff] (!%p1546_p6), %v2207_v0  ;;  %273 = vst [vmem:[#allocation2 + $0x48] sm:$0xff] (!%p1546_p6), %v2207_v0 }
  0x77   : > { %274 = vst [vmem:[#allocation2 + $0x50] sm:$0xff] (!%p1546_p6), %v2207_v0  ;;  %275 = vst [vmem:[#allocation2 + $0x58] sm:$0xff] (!%p1546_p6), %v2207_v0 }
  0x78   : > { %276 = vst [vmem:[#allocation2 + $0x60] sm:$0xff] (!%p1546_p6), %v2207_v0  ;;  %277 = vst [vmem:[#allocation2 + $0x68] sm:$0xff] (!%p1546_p6), %v2207_v0 }
  0x79   : > { %278 = vst [vmem:[#allocation2 + $0x70] sm:$0xff] %v2207_v0  ;;  %279 = vst [vmem:[#allocation2 + $0x78] sm:$0xff] %v2207_v0 }
  0x7a   : > { %280 = vst [vmem:[#allocation2 + $0x80] sm:$0xff] %v2207_v0  ;;  %281 = vst [vmem:[#allocation2 + $0x88] sm:$0xff] %v2207_v0 }
  0x7b   : > { %282 = vst [vmem:[#allocation2 + $0x90] sm:$0xff] %v2207_v0  ;;  %283 = vst [vmem:[#allocation2 + $0x98] sm:$0xff] %v2207_v0 }
  0x7c   : > { %284 = vst [vmem:[#allocation2 + $0xa0] sm:$0xff] %v2207_v0  ;;  %285 = vst [vmem:[#allocation2 + $0xa8] sm:$0xff] %v2207_v0 }
  0x7d   : > { %286 = vst [vmem:[#allocation2 + $0xb0] sm:$0xff] %v2207_v0  ;;  %287 = vst [vmem:[#allocation2 + $0xb8] sm:$0xff] %v2207_v0 }
  0x7e   : > { %288 = vst [vmem:[#allocation2 + $0xc0] sm:$0xff] %v2207_v0  ;;  %289 = vst [vmem:[#allocation2 + $0xc8] sm:$0xff] %v2207_v0 }
  0x7f   : > { %290 = vst [vmem:[#allocation2 + $0xd0] sm:$0xff] %v2207_v0  ;;  %291 = vst [vmem:[#allocation2 + $0xd8] sm:$0xff] %v2207_v0 }
  0x80   : > { %292 = vst [vmem:[#allocation2 + $0xe0] sm:$0xff] %v2207_v0  ;;  %293 = vst [vmem:[#allocation2 + $0xe8] sm:$0xff] %v2207_v0 }
  0x81   : > { %294 = vst [vmem:[#allocation2 + $0xf0] sm:$0xff] %v2207_v0  ;;  %295 = vst [vmem:[#allocation2 + $0xf8] sm:$0xff] %v2207_v0 }
  0x82 PF: > { %v329_v1 = vld [vmem:[%s2415_s26 + $0x8] sm:$0xff]  ;;  %v328_v3 = vld [vmem:[%s2415_s26] sm:$0xff]  ;;  %v331_v24 = vld [vmem:[%s2415_s26 + $0x18] sm:$0xff]  ;;  %p1579_p0 = scmp.ne.s32.totalorder %s2189_s15, 1 }
  0x83   : > { %v333_v2 = vld [vmem:[%s2415_s26 + $0x28] sm:$0xff]  ;;  %v332_v5 = vld [vmem:[%s2415_s26 + $0x20] sm:$0xff]  ;;  %v335_v25 = vld [vmem:[%s2415_s26 + $0x38] sm:$0xff] }
  0x84   : > { %v1587_v4 = vpack.c.bf16 %v333_v2, %v329_v1  ;;  %v337_v6 = vld [vmem:[%s2415_s26 + $0x48] sm:$0xff]  ;;  %v1589_v8 = vpack.c.bf16 %v332_v5, %v328_v3  ;;  %v336_v10 = vld [vmem:[%s2415_s26 + $0x40] sm:$0xff]  ;;  %v1651_v28 = vpack.c.bf16 %v335_v25, %v331_v24  ;;  %v330_v29 = vld [vmem:[%s2415_s26 + $0x10] sm:$0xff] }
  0x85   : > { %v341_v7 = vld [vmem:[%s2415_s26 + $0x68] sm:$0xff]  ;;  %v340_v11 = vld [vmem:[%s2415_s26 + $0x60] sm:$0xff]  ;;  %v334_v30 = vld [vmem:[%s2415_s26 + $0x30] sm:$0xff] }
  0x86   : > { %v1591_v9 = vpack.c.bf16 %v341_v7, %v337_v6  ;;  %v345_v12 = vld [vmem:[%s2415_s26 + $0x88] sm:$0xff]  ;;  %1588 = vmatprep.subr.bf16.mxu0 %v1587_v4  ;;  %v1593_v14 = vpack.c.bf16 %v340_v11, %v336_v10  ;;  %v344_v16 = vld [vmem:[%s2415_s26 + $0x80] sm:$0xff]  ;;  %1652 = vmatprep.subr.bf16.mxu1 %v1651_v28  ;;  %v1653_v33 = vpack.c.bf16 %v334_v30, %v330_v29  ;;  %v339_v34 = vld [vmem:[%s2415_s26 + $0x58] sm:$0xff] }
  0x87   : > { %v349_v13 = vld [vmem:[%s2415_s26 + $0xa8] sm:$0xff]  ;;  %1590 = vmatpush1.bf16.msra.mxu0 %v1589_v8  ;;  %v348_v17 = vld [vmem:[%s2415_s26 + $0xa0] sm:$0xff]  ;;  %v343_v35 = vld [vmem:[%s2415_s26 + $0x78] sm:$0xff] }
  0x88   : > { %1592 = vmatprep.subr.bf16.mxu0 %v1591_v9  ;;  %v1595_v15 = vpack.c.bf16 %v349_v13, %v345_v12  ;;  %v353_v18 = vld [vmem:[%s2415_s26 + $0xc8] sm:$0xff]  ;;  %v1597_v20 = vpack.c.bf16 %v348_v17, %v344_v16  ;;  %v352_v21 = vld [vmem:[%s2415_s26 + $0xc0] sm:$0xff]  ;;  %v1655_v38 = vpack.c.bf16 %v343_v35, %v339_v34  ;;  %v338_v39 = vld [vmem:[%s2415_s26 + $0x50] sm:$0xff]  ;;  %1654 = vmatpush1.bf16.msra.mxu1 %v1653_v33 }
  0x89   : > { %v357_v19 = vld [vmem:[%s2415_s26 + $0xe8] sm:$0xff]  ;;  %v356_v23 = vld [vmem:[%s2415_s26 + $0xe0] sm:$0xff]  ;;  %v342_v40 = vld [vmem:[%s2415_s26 + $0x70] sm:$0xff] }
  0x8a   : > { %v1599_v22 = vpack.c.bf16 %v357_v19, %v353_v18  ;;  %v361_v26 = vld [vmem:[%s2415_s26 + $0x108] sm:$0xff]  ;;  %v1601_v31 = vpack.c.bf16 %v356_v23, %v352_v21  ;;  %v360_v32 = vld [vmem:[%s2415_s26 + $0x100] sm:$0xff]  ;;  %v1657_v43 = vpack.c.bf16 %v342_v40, %v338_v39  ;;  %v347_v44 = vld [vmem:[%s2415_s26 + $0x98] sm:$0xff]  ;;  %1656 = vmatprep.subr.bf16.mxu1 %v1655_v38 }
  0x8b   : > { %1594 = vmatpush1.bf16.msra.mxu0 %v1593_v14  ;;  %v365_v27 = vld [vmem:[%s2415_s26 + $0x128] sm:$0xff]  ;;  %v364_v37 = vld [vmem:[%s2415_s26 + $0x120] sm:$0xff]  ;;  %v351_v45 = vld [vmem:[%s2415_s26 + $0xb8] sm:$0xff] }
  0x8c   : > { %1596 = vmatprep.subr.bf16.mxu0 %v1595_v15  ;;  %v1603_v36 = vpack.c.bf16 %v365_v27, %v361_v26  ;;  %v369_v41 = vld [vmem:[%s2415_s26 + $0x148] sm:$0xff]  ;;  %v1605_v46 = vpack.c.bf16 %v364_v37, %v360_v32  ;;  %v368_v47 = vld [vmem:[%s2415_s26 + $0x140] sm:$0xff]  ;;  %v1659_v48 = vpack.c.bf16 %v351_v45, %v347_v44  ;;  %v346_v49 = vld [vmem:[%s2415_s26 + $0x90] sm:$0xff]  ;;  %1658 = vmatpush1.bf16.msra.mxu1 %v1657_v43 }
  0x8d   : > { %v373_v42 = vld [vmem:[%s2415_s26 + $0x168] sm:$0xff]  ;;  %v350_v50 = vld [vmem:[%s2415_s26 + $0xb0] sm:$0xff]  ;;  %v372_v52 = vld [vmem:[%s2415_s26 + $0x160] sm:$0xff] }
  0x8e   : > { %v1607_v51 = vpack.c.bf16 %v373_v42, %v369_v41  ;;  %v355_v53 = vld [vmem:[%s2415_s26 + $0xd8] sm:$0xff]  ;;  %v377_v55 = vld [vmem:[%s2415_s26 + $0x188] sm:$0xff]  ;;  %v1661_v57 = vpack.c.bf16 %v350_v50, %v346_v49  ;;  %1660 = vmatprep.subr.bf16.mxu1 %v1659_v48  ;;  %v354_v59 = vld [vmem:[%s2415_s26 + $0xd0] sm:$0xff]  ;;  %v1609_v61 = vpack.c.bf16 %v372_v52, %v368_v47 }
  0x8f   : > { %1598 = vmatpush1.bf16.msra.mxu0 %v1597_v20  ;;  %v359_v54 = vld [vmem:[%s2415_s26 + $0xf8] sm:$0xff]  ;;  %v381_v56 = vld [vmem:[%s2415_s26 + $0x1a8] sm:$0xff]  ;;  %v358_v60 = vld [vmem:[%s2415_s26 + $0xf0] sm:$0xff] }
  0x90   : > { %1600 = vmatprep.subr.bf16.mxu0 %v1599_v22  ;;  %v1663_v58 = vpack.c.bf16 %v359_v54, %v355_v53  ;;  %v363_v62 = vld [vmem:[%s2415_s26 + $0x118] sm:$0xff]  ;;  %v1611_v0 = vpack.c.bf16 %v381_v56, %v377_v55  ;;  %v376_v1 = vld [vmem:[%s2415_s26 + $0x180] sm:$0xff]  ;;  %v385_v3 = vld [vmem:[%s2415_s26 + $0x1c8] sm:$0xff]  ;;  %1662 = vmatpush1.bf16.msra.mxu1 %v1661_v57  ;;  %v1665_v5 = vpack.c.bf16 %v358_v60, %v354_v59 }
  0x91   : > { %v367_v63 = vld [vmem:[%s2415_s26 + $0x138] sm:$0xff]  ;;  %v380_v2 = vld [vmem:[%s2415_s26 + $0x1a0] sm:$0xff]  ;;  %v389_v4 = vld [vmem:[%s2415_s26 + $0x1e8] sm:$0xff] }
  0x92   : > { %1664 = vmatprep.subr.bf16.mxu1 %v1663_v58  ;;  %v1667_v6 = vpack.c.bf16 %v367_v63, %v363_v62  ;;  %v362_v7 = vld [vmem:[%s2415_s26 + $0x110] sm:$0xff]  ;;  %v1613_v9 = vpack.c.bf16 %v380_v2, %v376_v1  ;;  %v371_v10 = vld [vmem:[%s2415_s26 + $0x158] sm:$0xff]  ;;  %v1615_v12 = vpack.c.bf16 %v389_v4, %v385_v3  ;;  %v384_v13 = vld [vmem:[%s2415_s26 + $0x1c0] sm:$0xff] }
  0x93   : > { %1602 = vmatpush1.bf16.msra.mxu0 %v1601_v31  ;;  %v366_v8 = vld [vmem:[%s2415_s26 + $0x130] sm:$0xff]  ;;  %v375_v11 = vld [vmem:[%s2415_s26 + $0x178] sm:$0xff]  ;;  %v388_v14 = vld [vmem:[%s2415_s26 + $0x1e0] sm:$0xff] }
  0x94   : > { %1604 = vmatprep.subr.bf16.mxu0 %v1603_v36  ;;  %v393_v15 = vld [vmem:[%s2415_s26 + $0x208] sm:$0xff]  ;;  %1666 = vmatpush1.bf16.msra.mxu1 %v1665_v5  ;;  %v1669_v17 = vpack.c.bf16 %v366_v8, %v362_v7  ;;  %v1671_v18 = vpack.c.bf16 %v375_v11, %v371_v10  ;;  %v370_v19 = vld [vmem:[%s2415_s26 + $0x150] sm:$0xff]  ;;  %v1617_v21 = vpack.c.bf16 %v388_v14, %v384_v13  ;;  %v379_v22 = vld [vmem:[%s2415_s26 + $0x198] sm:$0xff] }
  0x95   : > { %v397_v16 = vld [vmem:[%s2415_s26 + $0x228] sm:$0xff]  ;;  %1668 = vmatprep.subr.bf16.mxu1 %v1667_v6  ;;  %v374_v20 = vld [vmem:[%s2415_s26 + $0x170] sm:$0xff]  ;;  %v383_v23 = vld [vmem:[%s2415_s26 + $0x1b8] sm:$0xff] }
  0x96   : > { %v1619_v24 = vpack.c.bf16 %v397_v16, %v393_v15  ;;  %v392_v25 = vld [vmem:[%s2415_s26 + $0x200] sm:$0xff]  ;;  %v401_v27 = vld [vmem:[%s2415_s26 + $0x248] sm:$0xff]  ;;  %v1673_v29 = vpack.c.bf16 %v374_v20, %v370_v19  ;;  %v1675_v30 = vpack.c.bf16 %v383_v23, %v379_v22  ;;  %v378_v31 = vld [vmem:[%s2415_s26 + $0x190] sm:$0xff] }
  0x97   : > { %1606 = vmatpush1.bf16.msra.mxu0 %v1605_v46  ;;  %v396_v26 = vld [vmem:[%s2415_s26 + $0x220] sm:$0xff]  ;;  %v405_v28 = vld [vmem:[%s2415_s26 + $0x268] sm:$0xff]  ;;  %v382_v32 = vld [vmem:[%s2415_s26 + $0x1b0] sm:$0xff] }
  0x98   : > { %1608 = vmatprep.subr.bf16.mxu0 %v1607_v51  ;;  %1670 = vmatpush1.bf16.msra.mxu1 %v1669_v17  ;;  %v1621_v33 = vpack.c.bf16 %v396_v26, %v392_v25  ;;  %v387_v34 = vld [vmem:[%s2415_s26 + $0x1d8] sm:$0xff]  ;;  %v1623_v36 = vpack.c.bf16 %v405_v28, %v401_v27  ;;  %v400_v37 = vld [vmem:[%s2415_s26 + $0x240] sm:$0xff]  ;;  %v297_v39 = vld [vmem:[#allocation3 + $0x8] sm:$0xff]  ;;  %v1677_v42 = vpack.c.bf16 %v382_v32, %v378_v31 }
  0x99   : > { %1672 = vmatprep.subr.bf16.mxu1 %v1671_v18  ;;  %v391_v35 = vld [vmem:[%s2415_s26 + $0x1f8] sm:$0xff]  ;;  %v404_v38 = vld [vmem:[%s2415_s26 + $0x260] sm:$0xff]  ;;  %v409_v40 = vld [vmem:[%s2415_s26 + $0x288] sm:$0xff]  ;;  %520 = vmatprep.mubr.f32.mxu0 %v297_v39 }
  0x9a   : > { %v413_v41 = vld [vmem:[%s2415_s26 + $0x2a8] sm:$0xff]  ;;  %v1679_v43 = vpack.c.bf16 %v391_v35, %v387_v34  ;;  %v386_v44 = vld [vmem:[%s2415_s26 + $0x1d0] sm:$0xff]  ;;  %681 = vmatprep.mubr.f32.mxu1 %v297_v39  ;;  %v1625_v46 = vpack.c.bf16 %v404_v38, %v400_v37  ;;  %v395_v47 = vld [vmem:[%s2415_s26 + $0x218] sm:$0xff] }
  0x9b   : > { %1610 = vmatpush1.bf16.msra.mxu0 %v1609_v61  ;;  %v390_v45 = vld [vmem:[%s2415_s26 + $0x1f0] sm:$0xff]  ;;  %v399_v48 = vld [vmem:[%s2415_s26 + $0x238] sm:$0xff]  ;;  %v1627_v49 = vpack.c.bf16 %v413_v41, %v409_v40  ;;  %v408_v50 = vld [vmem:[%s2415_s26 + $0x280] sm:$0xff] }
  0x9c   : > { %1612 = vmatprep.subr.bf16.mxu0 %v1611_v0  ;;  %1674 = vmatpush1.bf16.msra.mxu1 %v1673_v29  ;;  %v412_v51 = vld [vmem:[%s2415_s26 + $0x2a0] sm:$0xff]  ;;  %v417_v52 = vld [vmem:[%s2415_s26 + $0x2c8] sm:$0xff]  ;;  %v1681_v54 = vpack.c.bf16 %v390_v45, %v386_v44  ;;  %v1683_v55 = vpack.c.bf16 %v399_v48, %v395_v47  ;;  %v394_v56 = vld [vmem:[%s2415_s26 + $0x210] sm:$0xff] }
  0x9d   : > { %1676 = vmatprep.subr.bf16.mxu1 %v1675_v30  ;;  %v421_v53 = vld [vmem:[%s2415_s26 + $0x2e8] sm:$0xff]  ;;  %v398_v57 = vld [vmem:[%s2415_s26 + $0x230] sm:$0xff]  ;;  %v1629_v58 = vpack.c.bf16 %v412_v51, %v408_v50  ;;  %v403_v59 = vld [vmem:[%s2415_s26 + $0x258] sm:$0xff] }
  0x9e   : > { %v407_v60 = vld [vmem:[%s2415_s26 + $0x278] sm:$0xff]  ;;  %v1631_v61 = vpack.c.bf16 %v421_v53, %v417_v52  ;;  %v416_v62 = vld [vmem:[%s2415_s26 + $0x2c0] sm:$0xff]  ;;  %v425_v0 = vld [vmem:[%s2415_s26 + $0x308] sm:$0xff]  ;;  %v1685_v2 = vpack.c.bf16 %v398_v57, %v394_v56 }
  0x9f   : > { %1614 = vmatpush1.bf16.msra.mxu0 %v1613_v9  ;;  %v420_v63 = vld [vmem:[%s2415_s26 + $0x2e0] sm:$0xff]  ;;  %v429_v1 = vld [vmem:[%s2415_s26 + $0x328] sm:$0xff]  ;;  %v1687_v3 = vpack.c.bf16 %v407_v60, %v403_v59  ;;  %v402_v4 = vld [vmem:[%s2415_s26 + $0x250] sm:$0xff] }
  0xa0   : > { %1616 = vmatprep.subr.bf16.mxu0 %v1615_v12  ;;  %1678 = vmatpush1.bf16.msra.mxu1 %v1677_v42  ;;  %v406_v5 = vld [vmem:[%s2415_s26 + $0x270] sm:$0xff]  ;;  %v1633_v6 = vpack.c.bf16 %v420_v63, %v416_v62  ;;  %v411_v7 = vld [vmem:[%s2415_s26 + $0x298] sm:$0xff]  ;;  %v1635_v9 = vpack.c.bf16 %v429_v1, %v425_v0  ;;  %v424_v10 = vld [vmem:[%s2415_s26 + $0x300] sm:$0xff] }
  0xa1   : > { %1680 = vmatprep.subr.bf16.mxu1 %v1679_v43  ;;  %v415_v8 = vld [vmem:[%s2415_s26 + $0x2b8] sm:$0xff]  ;;  %v428_v11 = vld [vmem:[%s2415_s26 + $0x320] sm:$0xff]  ;;  %v433_v12 = vld [vmem:[%s2415_s26 + $0x348] sm:$0xff]  ;;  %v1689_v14 = vpack.c.bf16 %v406_v5, %v402_v4 }
  0xa2   : > { %v437_v13 = vld [vmem:[%s2415_s26 + $0x368] sm:$0xff]  ;;  %v1691_v15 = vpack.c.bf16 %v415_v8, %v411_v7  ;;  %v410_v16 = vld [vmem:[%s2415_s26 + $0x290] sm:$0xff]  ;;  %v1637_v18 = vpack.c.bf16 %v428_v11, %v424_v10  ;;  %v419_v19 = vld [vmem:[%s2415_s26 + $0x2d8] sm:$0xff] }
  0xa3   : > { %1618 = vmatpush1.bf16.msra.mxu0 %v1617_v21  ;;  %v414_v17 = vld [vmem:[%s2415_s26 + $0x2b0] sm:$0xff]  ;;  %v423_v20 = vld [vmem:[%s2415_s26 + $0x2f8] sm:$0xff]  ;;  %v1639_v21 = vpack.c.bf16 %v437_v13, %v433_v12  ;;  %v432_v22 = vld [vmem:[%s2415_s26 + $0x340] sm:$0xff] }
  0xa4   : > { %1620 = vmatprep.subr.bf16.mxu0 %v1619_v24  ;;  %1682 = vmatpush1.bf16.msra.mxu1 %v1681_v54  ;;  %v436_v23 = vld [vmem:[%s2415_s26 + $0x360] sm:$0xff]  ;;  %v441_v24 = vld [vmem:[%s2415_s26 + $0x388] sm:$0xff]  ;;  %v1693_v26 = vpack.c.bf16 %v414_v17, %v410_v16  ;;  %v1695_v27 = vpack.c.bf16 %v423_v20, %v419_v19  ;;  %v418_v28 = vld [vmem:[%s2415_s26 + $0x2d0] sm:$0xff] }
  0xa5   : > { %1684 = vmatprep.subr.bf16.mxu1 %v1683_v55  ;;  %v445_v25 = vld [vmem:[%s2415_s26 + $0x3a8] sm:$0xff]  ;;  %v422_v29 = vld [vmem:[%s2415_s26 + $0x2f0] sm:$0xff]  ;;  %v1641_v30 = vpack.c.bf16 %v436_v23, %v432_v22  ;;  %v427_v31 = vld [vmem:[%s2415_s26 + $0x318] sm:$0xff] }
  0xa6   : > { %v431_v32 = vld [vmem:[%s2415_s26 + $0x338] sm:$0xff]  ;;  %v440_v34 = vld [vmem:[%s2415_s26 + $0x380] sm:$0xff]  ;;  %v453_v37 = vld [vmem:[%s2415_s26 + $0x3e8] sm:$0xff]  ;;  %v1697_v38 = vpack.c.bf16 %v422_v29, %v418_v28 }
  0xa7   : > { %1622 = vmatpush1.bf16.msra.mxu0 %v1621_v33  ;;  %v1643_v33 = vpack.c.bf16 %v445_v25, %v441_v24  ;;  %v444_v35 = vld [vmem:[%s2415_s26 + $0x3a0] sm:$0xff]  ;;  %v1699_v39 = vpack.c.bf16 %v431_v32, %v427_v31  ;;  %v426_v40 = vld [vmem:[%s2415_s26 + $0x310] sm:$0xff]  ;;  %v435_v43 = vld [vmem:[%s2415_s26 + $0x358] sm:$0xff] }
  0xa8   : > { %1624 = vmatprep.subr.bf16.mxu0 %v1623_v36  ;;  %1686 = vmatpush1.bf16.msra.mxu1 %v1685_v2  ;;  %v449_v36 = vld [vmem:[%s2415_s26 + $0x3c8] sm:$0xff]  ;;  %v430_v41 = vld [vmem:[%s2415_s26 + $0x330] sm:$0xff]  ;;  %v1645_v42 = vpack.c.bf16 %v444_v35, %v440_v34  ;;  %v439_v44 = vld [vmem:[%s2415_s26 + $0x378] sm:$0xff] }
  0xa9   : > { %1688 = vmatprep.subr.bf16.mxu1 %v1687_v3  ;;  %v1647_v45 = vpack.c.bf16 %v453_v37, %v449_v36  ;;  %v452_v47 = vld [vmem:[%s2415_s26 + $0x3e0] sm:$0xff]  ;;  %v1701_v48 = vpack.c.bf16 %v430_v41, %v426_v40  ;;  %v1069_v50 = vld [vmem:[%s2421_s7 + $0x18] sm:$0xff]  ;;  %v1703_v51 = vpack.c.bf16 %v439_v44, %v435_v43  ;;  %v434_v52 = vld [vmem:[%s2415_s26 + $0x350] sm:$0xff] }
  0xaa   : > { %v438_v53 = vld [vmem:[%s2415_s26 + $0x370] sm:$0xff]  ;;  %v443_v55 = vld [vmem:[%s2415_s26 + $0x398] sm:$0xff]  ;;  %v296_v2 = vld [vmem:[#allocation3] sm:$0xff] }
  0xab   : > { %1626 = vmatpush1.bf16.msra.mxu0 %v1625_v46  ;;  %v448_v46 = vld [vmem:[%s2415_s26 + $0x3c0] sm:$0xff]  ;;  %v447_v56 = vld [vmem:[%s2415_s26 + $0x3b8] sm:$0xff]  ;;  %v1068_v59 = vld [vmem:[%s2421_s7 + $0x10] sm:$0xff]  ;;  %v1705_v60 = vpack.c.bf16 %v438_v53, %v434_v52 }
  0xac   : > { %1628 = vmatprep.subr.bf16.mxu0 %v1627_v49  ;;  %1690 = vmatpush1.bf16.msra.mxu1 %v1689_v14  ;;  %v1067_v49 = vld [vmem:[%s2421_s7 + $0x8] sm:$0xff]  ;;  %v1649_v54 = vpack.c.bf16 %v452_v47, %v448_v46  ;;  %v1073_v62 = vld [vmem:[%s2421_s7 + $0x38] sm:$0xff]  ;;  %v1707_v63 = vpack.c.bf16 %v447_v56, %v443_v55  ;;  %v442_v0 = vld [vmem:[%s2415_s26 + $0x390] sm:$0xff] }
  0xad   : > { %1692 = vmatprep.subr.bf16.mxu1 %v1691_v15  ;;  %v1715_v57 = vpack.c.bf16 %v1069_v50, %v1067_v49  ;;  %v446_v1 = vld [vmem:[%s2415_s26 + $0x3b0] sm:$0xff]  ;;  %v451_v3 = vld [vmem:[%s2415_s26 + $0x3d8] sm:$0xff]  ;;  %v1070_v8 = vld [vmem:[%s2421_s7 + $0x20] sm:$0xff] }
  0xae   : > { %v455_v4 = vld [vmem:[%s2415_s26 + $0x3f8] sm:$0xff]  ;;  %v1709_v10 = vpack.c.bf16 %v446_v1, %v442_v0  ;;  %v1075_v11 = vld [vmem:[%s2421_s7 + $0x48] sm:$0xff]  ;;  %v450_v14 = vld [vmem:[%s2415_s26 + $0x3d0] sm:$0xff] }
  0xaf   : > { %1630 = vmatpush1.bf16.msra.mxu0 %v1629_v58  ;;  %v1066_v58 = vld [vmem:[%s2421_s7] sm:$0xff]  ;;  %v1077_v12 = vld [vmem:[%s2421_s7 + $0x58] sm:$0xff]  ;;  %v1711_v13 = vpack.c.bf16 %v455_v4, %v451_v3  ;;  %v454_v15 = vld [vmem:[%s2415_s26 + $0x3f0] sm:$0xff] }
  0xb0   : > { %1632 = vmatprep.subr.bf16.mxu0 %v1631_v61  ;;  %1694 = vmatpush1.bf16.msra.mxu1 %v1693_v26  ;;  %v1071_v61 = vld [vmem:[%s2421_s7 + $0x28] sm:$0xff]  ;;  %v1717_v5 = vpack.c.bf16 %v1068_v59, %v1066_v58  ;;  %v298_v16 = vld [vmem:[#allocation3 + $0x10] sm:$0xff]  ;;  %v1723_v19 = vpack.c.bf16 %v1077_v12, %v1075_v11  ;;  %v1074_v20 = vld [vmem:[%s2421_s7 + $0x40] sm:$0xff]  ;;  %v1713_v22 = vpack.c.bf16 %v454_v15, %v450_v14 }
  0xb1   : > { %1696 = vmatprep.subr.bf16.mxu1 %v1695_v27  ;;  %v1719_v7 = vpack.c.bf16 %v1073_v62, %v1071_v61  ;;  %v1079_v23 = vld [vmem:[%s2421_s7 + $0x68] sm:$0xff]  ;;  %v1081_v24 = vld [vmem:[%s2421_s7 + $0x78] sm:$0xff]  ;;  %v300_v25 = vld [vmem:[#allocation3 + $0x20] sm:$0xff] }
  0xb2   : > { %v303_v27 = vld [vmem:[#allocation3 + $0x38] sm:$0xff]  ;;  %v1727_v28 = vpack.c.bf16 %v1081_v24, %v1079_v23  ;;  %v1078_v29 = vld [vmem:[%s2421_s7 + $0x60] sm:$0xff]  ;;  %v1083_v31 = vld [vmem:[%s2421_s7 + $0x88] sm:$0xff] }
  0xb3   : > { %1634 = vmatpush1.bf16.msra.mxu0 %v1633_v6  ;;  %v299_v6 = vld [vmem:[#allocation3 + $0x18] sm:$0xff]  ;;  %v305_v35 = vld [vmem:[#allocation3 + $0x48] sm:$0xff]  ;;  %v1082_v37 = vld [vmem:[%s2421_s7 + $0x80] sm:$0xff] }
  0xb4   : > { %1636 = vmatprep.subr.bf16.mxu0 %v1635_v9  ;;  %1698 = vmatpush1.bf16.msra.mxu1 %v1697_v38  ;;  %v1072_v9 = vld [vmem:[%s2421_s7 + $0x30] sm:$0xff]  ;;  %v1085_v32 = vld [vmem:[%s2421_s7 + $0x98] sm:$0xff]  ;;  %v304_v41 = vld [vmem:[#allocation3 + $0x40] sm:$0xff] }
  0xb5   : > { %1700 = vmatprep.subr.bf16.mxu1 %v1699_v39  ;;  %v1721_v17 = vpack.c.bf16 %v1072_v9, %v1070_v8  ;;  %v1731_v36 = vpack.c.bf16 %v1085_v32, %v1083_v31  ;;  %v1084_v38 = vld [vmem:[%s2421_s7 + $0x90] sm:$0xff]  ;;  %v1087_v39 = vld [vmem:[%s2421_s7 + $0xa8] sm:$0xff]  ;;  %v1089_v40 = vld [vmem:[%s2421_s7 + $0xb8] sm:$0xff] }
  0xb6   : > { %v307_v43 = vld [vmem:[#allocation3 + $0x58] sm:$0xff]  ;;  %v1735_v44 = vpack.c.bf16 %v1089_v40, %v1087_v39  ;;  %v1088_v46 = vld [vmem:[%s2421_s7 + $0xb0] sm:$0xff]  ;;  %v1091_v47 = vld [vmem:[%s2421_s7 + $0xc8] sm:$0xff] }
  0xb7   : > { %1638 = vmatpush1.bf16.msra.mxu0 %v1637_v18  ;;  %v301_v18 = vld [vmem:[#allocation3 + $0x28] sm:$0xff]  ;;  %v306_v49 = vld [vmem:[#allocation3 + $0x50] sm:$0xff]  ;;  %v1090_v53 = vld [vmem:[%s2421_s7 + $0xc0] sm:$0xff] }
  0xb8   : > { %1640 = vmatprep.subr.bf16.mxu0 %v1639_v21  ;;  %1702 = vmatpush1.bf16.msra.mxu1 %v1701_v48  ;;  %v1076_v21 = vld [vmem:[%s2421_s7 + $0x50] sm:$0xff]  ;;  %v1093_v48 = vld [vmem:[%s2421_s7 + $0xd8] sm:$0xff]  ;;  %v1095_v55 = vld [vmem:[%s2421_s7 + $0xe8] sm:$0xff] }
  0xb9   : > { %1704 = vmatprep.subr.bf16.mxu1 %v1703_v51  ;;  %v1725_v26 = vpack.c.bf16 %v1076_v21, %v1074_v20  ;;  %v309_v51 = vld [vmem:[#allocation3 + $0x68] sm:$0xff]  ;;  %v1739_v52 = vpack.c.bf16 %v1093_v48, %v1091_v47  ;;  %v1097_v56 = vld [vmem:[%s2421_s7 + $0xf8] sm:$0xff]  ;;  %v1094_v61 = vld [vmem:[%s2421_s7 + $0xe0] sm:$0xff] }
  0xba   : > { %v311_v59 = vld [vmem:[#allocation3 + $0x78] sm:$0xff]  ;;  %v1096_v62 = vld [vmem:[%s2421_s7 + $0xf0] sm:$0xff]  ;;  %v313_v1 = vld [vmem:[#allocation3 + $0x88] sm:$0xff] }
  0xbb   : > { %1642 = vmatpush1.bf16.msra.mxu0 %v1641_v30  ;;  %v1080_v30 = vld [vmem:[%s2421_s7 + $0x70] sm:$0xff]  ;;  %v1745_v0 = vpack.c.bf16 %v1096_v62, %v1094_v61  ;;  %v315_v3 = vld [vmem:[#allocation3 + $0x98] sm:$0xff]  ;;  %v321_v9 = vld [vmem:[#allocation3 + $0xc8] sm:$0xff] }
  0xbc   : > { %1644 = vmatprep.subr.bf16.mxu0 %v1643_v33  ;;  %1706 = vmatpush1.bf16.msra.mxu1 %v1705_v60  ;;  %v302_v33 = vld [vmem:[#allocation3 + $0x30] sm:$0xff]  ;;  %v1729_v34 = vpack.c.bf16 %v1080_v30, %v1078_v29  ;;  %v1743_v60 = vpack.c.bf16 %v1097_v56, %v1095_v55  ;;  %v323_v11 = vld [vmem:[#allocation3 + $0xd8] sm:$0xff]  ;;  %v324_v14 = vld [vmem:[#allocation3 + $0xe0] sm:$0xff] }
  0xbd   : > { %1708 = vmatprep.subr.bf16.mxu1 %v1707_v63  ;;  %v310_v63 = vld [vmem:[#allocation3 + $0x70] sm:$0xff]  ;;  %v327_v15 = vld [vmem:[#allocation3 + $0xf8] sm:$0xff]  ;;  %v1098_v20 = vld [vmem:[%s2421_s7 + $0x100] sm:$0xff] }
  0xbe   : > { %v314_v4 = vld [vmem:[#allocation3 + $0x90] sm:$0xff]  ;;  %v1103_v23 = vld [vmem:[%s2421_s7 + $0x128] sm:$0xff]  ;;  %v1105_v24 = vld [vmem:[%s2421_s7 + $0x138] sm:$0xff] }
  0xbf   : > { %1646 = vmatpush1.bf16.msra.mxu0 %v1645_v42  ;;  %v1733_v42 = vpack.c.bf16 %v1084_v38, %v1082_v37  ;;  %v318_v8 = vld [vmem:[#allocation3 + $0xb0] sm:$0xff]  ;;  %v1107_v29 = vld [vmem:[%s2421_s7 + $0x148] sm:$0xff]  ;;  %v1109_v30 = vld [vmem:[%s2421_s7 + $0x158] sm:$0xff] }
  0xc0   : > { %1648 = vmatprep.subr.bf16.mxu0 %v1647_v45  ;;  %1710 = vmatpush1.bf16.msra.mxu1 %v1709_v10  ;;  %v1086_v45 = vld [vmem:[%s2421_s7 + $0xa0] sm:$0xff]  ;;  %v322_v12 = vld [vmem:[#allocation3 + $0xd0] sm:$0xff]  ;;  %v1755_v31 = vpack.c.bf16 %v1109_v30, %v1107_v29  ;;  %v1119_v47 = vld [vmem:[%s2421_s7 + $0x1a8] sm:$0xff] }
  0xc1   : > { %1712 = vmatprep.subr.bf16.mxu1 %v1711_v13  ;;  %v1737_v50 = vpack.c.bf16 %v1088_v46, %v1086_v45  ;;  %v320_v10 = vld [vmem:[#allocation3 + $0xc0] sm:$0xff]  ;;  %v325_v13 = vld [vmem:[#allocation3 + $0xe8] sm:$0xff]  ;;  %v1100_v21 = vld [vmem:[%s2421_s7 + $0x110] sm:$0xff] }
  0xc2   : > { %v1106_v32 = vld [vmem:[%s2421_s7 + $0x140] sm:$0xff]  ;;  %v1112_v39 = vld [vmem:[%s2421_s7 + $0x170] sm:$0xff]  ;;  %v1121_v48 = vld [vmem:[%s2421_s7 + $0x1b8] sm:$0xff] }
  0xc3   : > { %1650 = vmatpush1.bf16.msra.mxu0 %v1649_v54  ;;  %v1092_v54 = vld [vmem:[%s2421_s7 + $0xd0] sm:$0xff]  ;;  %v1110_v38 = vld [vmem:[%s2421_s7 + $0x160] sm:$0xff] }
  0xc4   : > { %1716 = vmatprep.subr.bf16.mxu0 %v1715_v57  ;;  %1714 = vmatpush1.bf16.msra.mxu1 %v1713_v22  ;;  %v1741_v58 = vpack.c.bf16 %v1092_v54, %v1090_v53  ;;  %v1749_v22 = vpack.c.bf16 %v1100_v21, %v1098_v20  ;;  %v1761_v40 = vpack.c.bf16 %v1112_v39, %v1110_v38  ;;  %v1116_v45 = vld [vmem:[%s2421_s7 + $0x190] sm:$0xff]  ;;  %v1123_v53 = vld [vmem:[%s2421_s7 + $0x1c8] sm:$0xff]  ;;  %v1125_v54 = vld [vmem:[%s2421_s7 + $0x1d8] sm:$0xff] }
  0xc5   : > { %1779 = vmatprep.subr.bf16.mxu1 %v1715_v57  ;;  %v308_v57 = vld [vmem:[#allocation3 + $0x60] sm:$0xff]  ;;  %v1771_v55 = vpack.c.bf16 %v1125_v54, %v1123_v53 }
  0xc6   : > { %521 = vmatmul.mubr.f32.vlgmr.msra.gmra.mrb[0].mxu0 %v296_v2  ;;  %v1122_v56 = vld [vmem:[%s2421_s7 + $0x1c0] sm:$0xff] }
  0xc7   : > { %526 = vmatprep.mubr.f32.mxu0 %v299_v6  ;;  %1718 = vmatpush1.bf16.msra.mxu0 %v1717_v5  ;;  %v1126_v62 = vld [vmem:[%s2421_s7 + $0x1e0] sm:$0xff] }
  0xc8   : > { %1720 = vmatprep.subr.bf16.mxu0 %v1719_v7  ;;  %682 = vmatmul.mubr.f32.vlgmr.msra.gmra.mrb[0].mxu1 %v296_v2  ;;  %v312_v2 = vld [vmem:[#allocation3 + $0x80] sm:$0xff] }
  0xc9   : > { %687 = vmatprep.mubr.f32.mxu1 %v299_v6  ;;  %1795 = vmatpush1.bf16.msra.mxu1 %v1717_v5  ;;  %v317_v5 = vld [vmem:[#allocation3 + $0xa8] sm:$0xff]  ;;  %v316_v6 = vld [vmem:[#allocation3 + $0xa0] sm:$0xff] }
  0xca   : > { %527 = vmatmul.mubr.f32.gmra.mrb[2].mxu0 %v298_v16  ;;  %1780 = vmatprep.subr.bf16.mxu1 %v1719_v7  ;;  %v319_v7 = vld [vmem:[#allocation3 + $0xb8] sm:$0xff] }
  0xcb   : > { %532 = vmatprep.mubr.f32.mxu0 %v301_v18  ;;  %1722 = vmatpush1.bf16.msra.mxu0 %v1721_v17 }
  0xcc   : > { %1724 = vmatprep.subr.bf16.mxu0 %v1723_v19  ;;  %688 = vmatmul.mubr.f32.gmra.mrb[2].mxu1 %v298_v16  ;;  %v326_v16 = vld [vmem:[#allocation3 + $0xf0] sm:$0xff] }
  0xcd   : > { %693 = vmatprep.mubr.f32.mxu1 %v301_v18  ;;  %1796 = vmatpush1.bf16.msra.mxu1 %v1721_v17  ;;  %v1099_v17 = vld [vmem:[%s2421_s7 + $0x108] sm:$0xff]  ;;  %v1101_v18 = vld [vmem:[%s2421_s7 + $0x118] sm:$0xff] }
  0xce   : > { %533 = vmatmul.mubr.f32.gmra.mrb[4].mxu0 %v300_v25  ;;  %1781 = vmatprep.subr.bf16.mxu1 %v1723_v19  ;;  %v1747_v19 = vpack.c.bf16 %v1101_v18, %v1099_v17 }
  0xcf   : > { %538 = vmatprep.mubr.f32.mxu0 %v303_v27  ;;  %1726 = vmatpush1.bf16.msra.mxu0 %v1725_v26 }
  0xd0   : > { %1728 = vmatprep.subr.bf16.mxu0 %v1727_v28  ;;  %694 = vmatmul.mubr.f32.gmra.mrb[4].mxu1 %v300_v25  ;;  %v1751_v25 = vpack.c.bf16 %v1105_v24, %v1103_v23 }
  0xd1   : > { %699 = vmatprep.mubr.f32.mxu1 %v303_v27  ;;  %1797 = vmatpush1.bf16.msra.mxu1 %v1725_v26  ;;  %v1102_v26 = vld [vmem:[%s2421_s7 + $0x120] sm:$0xff]  ;;  %v1104_v27 = vld [vmem:[%s2421_s7 + $0x130] sm:$0xff] }
  0xd2   : > { %539 = vmatmul.mubr.f32.gmra.mrb[6].mxu0 %v302_v33  ;;  %1782 = vmatprep.subr.bf16.mxu1 %v1727_v28  ;;  %v1753_v28 = vpack.c.bf16 %v1104_v27, %v1102_v26 }
  0xd3   : > { %544 = vmatprep.mubr.f32.mxu0 %v305_v35  ;;  %1730 = vmatpush1.bf16.msra.mxu0 %v1729_v34 }
  0xd4   : > { %1732 = vmatprep.subr.bf16.mxu0 %v1731_v36  ;;  %700 = vmatmul.mubr.f32.gmra.mrb[6].mxu1 %v302_v33  ;;  %v1108_v33 = vld [vmem:[%s2421_s7 + $0x150] sm:$0xff] }
  0xd5   : > { %705 = vmatprep.mubr.f32.mxu1 %v305_v35  ;;  %1798 = vmatpush1.bf16.msra.mxu1 %v1729_v34  ;;  %v1757_v34 = vpack.c.bf16 %v1108_v33, %v1106_v32  ;;  %v1111_v35 = vld [vmem:[%s2421_s7 + $0x168] sm:$0xff] }
  0xd6   : > { %545 = vmatmul.mubr.f32.gmra.mrb[8].mxu0 %v304_v41  ;;  %1783 = vmatprep.subr.bf16.mxu1 %v1731_v36  ;;  %v1113_v36 = vld [vmem:[%s2421_s7 + $0x178] sm:$0xff] }
  0xd7   : > { %550 = vmatprep.mubr.f32.mxu0 %v307_v43  ;;  %1734 = vmatpush1.bf16.msra.mxu0 %v1733_v42  ;;  %v1759_v37 = vpack.c.bf16 %v1113_v36, %v1111_v35 }
  0xd8   : > { %1736 = vmatprep.subr.bf16.mxu0 %v1735_v44  ;;  %706 = vmatmul.mubr.f32.gmra.mrb[8].mxu1 %v304_v41  ;;  %v1115_v41 = vld [vmem:[%s2421_s7 + $0x188] sm:$0xff] }
  0xd9   : > { %711 = vmatprep.mubr.f32.mxu1 %v307_v43  ;;  %1799 = vmatpush1.bf16.msra.mxu1 %v1733_v42  ;;  %v1117_v42 = vld [vmem:[%s2421_s7 + $0x198] sm:$0xff] }
  0xda   : > { %551 = vmatmul.mubr.f32.gmra.mrb[10].mxu0 %v306_v49  ;;  %1784 = vmatprep.subr.bf16.mxu1 %v1735_v44  ;;  %v1763_v43 = vpack.c.bf16 %v1117_v42, %v1115_v41  ;;  %v1114_v44 = vld [vmem:[%s2421_s7 + $0x180] sm:$0xff] }
  0xdb   : > { %556 = vmatprep.mubr.f32.mxu0 %v309_v51  ;;  %1738 = vmatpush1.bf16.msra.mxu0 %v1737_v50  ;;  %v1765_v46 = vpack.c.bf16 %v1116_v45, %v1114_v44 }
  0xdc   : > { %1740 = vmatprep.subr.bf16.mxu0 %v1739_v52  ;;  %712 = vmatmul.mubr.f32.gmra.mrb[10].mxu1 %v306_v49  ;;  %v1767_v49 = vpack.c.bf16 %v1121_v48, %v1119_v47 }
  0xdd   : > { %717 = vmatprep.mubr.f32.mxu1 %v309_v51  ;;  %1800 = vmatpush1.bf16.msra.mxu1 %v1737_v50  ;;  %v1118_v50 = vld [vmem:[%s2421_s7 + $0x1a0] sm:$0xff]  ;;  %v1120_v51 = vld [vmem:[%s2421_s7 + $0x1b0] sm:$0xff] }
  0xde   : > { %557 = vmatmul.mubr.f32.gmra.mrb[12].mxu0 %v308_v57  ;;  %1785 = vmatprep.subr.bf16.mxu1 %v1739_v52  ;;  %v1769_v52 = vpack.c.bf16 %v1120_v51, %v1118_v50 }
  0xdf   : > { %562 = vmatprep.mubr.f32.mxu0 %v311_v59  ;;  %1742 = vmatpush1.bf16.msra.mxu0 %v1741_v58 }
  0xe0   : > { %1744 = vmatprep.subr.bf16.mxu0 %v1743_v60  ;;  %718 = vmatmul.mubr.f32.gmra.mrb[12].mxu1 %v308_v57  ;;  %v1124_v57 = vld [vmem:[%s2421_s7 + $0x1d0] sm:$0xff] }
  0xe1   : > { %723 = vmatprep.mubr.f32.mxu1 %v311_v59  ;;  %1801 = vmatpush1.bf16.msra.mxu1 %v1741_v58  ;;  %v1773_v58 = vpack.c.bf16 %v1124_v57, %v1122_v56  ;;  %v1127_v59 = vld [vmem:[%s2421_s7 + $0x1e8] sm:$0xff] }
  0xe2   : > { %563 = vmatmul.mubr.f32.gmra.mrb[14].mxu0 %v310_v63  ;;  %1786 = vmatprep.subr.bf16.mxu1 %v1743_v60  ;;  %v1129_v60 = vld [vmem:[%s2421_s7 + $0x1f8] sm:$0xff] }
  0xe3   : > { %568 = vmatprep.mubr.f32.mxu0 %v313_v1  ;;  %1746 = vmatpush1.bf16.msra.mxu0 %v1745_v0  ;;  %v1775_v61 = vpack.c.bf16 %v1129_v60, %v1127_v59 }
  0xe4   : > { %724 = vmatmul.mubr.f32.gmra.mrb[14].mxu1 %v310_v63  ;;  %1748 = vmatprep.subr.bf16.mxu0 %v1747_v19  ;;  %v1128_v63 = vld [vmem:[%s2421_s7 + $0x1f0] sm:$0xff] }
  0xe5   : > { %729 = vmatprep.mubr.f32.mxu1 %v313_v1  ;;  %1802 = vmatpush1.bf16.msra.mxu1 %v1745_v0  ;;  %v1777_v0 = vpack.c.bf16 %v1128_v63, %v1126_v62 }
  0xe6   : > { %569 = vmatmul.mubr.f32.gmra.mrb[16].mxu0 %v312_v2  ;;  %1787 = vmatprep.subr.bf16.mxu1 %v1747_v19 }
  0xe7   : > { %574 = vmatprep.mubr.f32.mxu0 %v315_v3  ;;  %1750 = vmatpush1.bf16.msra.mxu0 %v1749_v22 }
  0xe8   : > { %730 = vmatmul.mubr.f32.gmra.mrb[16].mxu1 %v312_v2  ;;  %1752 = vmatprep.subr.bf16.mxu0 %v1751_v25 }
  0xe9   : > { %735 = vmatprep.mubr.f32.mxu1 %v315_v3  ;;  %1803 = vmatpush1.bf16.msra.mxu1 %v1749_v22 }
  0xea   : > { %575 = vmatmul.mubr.f32.gmra.mrb[18].mxu0 %v314_v4  ;;  %1788 = vmatprep.subr.bf16.mxu1 %v1751_v25 }
  0xeb   : > { %580 = vmatprep.mubr.f32.mxu0 %v317_v5  ;;  %1754 = vmatpush1.bf16.msra.mxu0 %v1753_v28 }
  0xec   : > { %736 = vmatmul.mubr.f32.gmra.mrb[18].mxu1 %v314_v4  ;;  %1756 = vmatprep.subr.bf16.mxu0 %v1755_v31 }
  0xed   : > { %741 = vmatprep.mubr.f32.mxu1 %v317_v5  ;;  %1804 = vmatpush1.bf16.msra.mxu1 %v1753_v28 }
  0xee   : > { %581 = vmatmul.mubr.f32.gmra.mrb[20].mxu0 %v316_v6  ;;  %1789 = vmatprep.subr.bf16.mxu1 %v1755_v31 }
  0xef   : > { %586 = vmatprep.mubr.f32.mxu0 %v319_v7  ;;  %1758 = vmatpush1.bf16.msra.mxu0 %v1757_v34 }
  0xf0   : > { %742 = vmatmul.mubr.f32.gmra.mrb[20].mxu1 %v316_v6  ;;  %1760 = vmatprep.subr.bf16.mxu0 %v1759_v37 }
  0xf1   : > { %747 = vmatprep.mubr.f32.mxu1 %v319_v7  ;;  %1805 = vmatpush1.bf16.msra.mxu1 %v1757_v34 }
  0xf2   : > { %587 = vmatmul.mubr.f32.gmra.mrb[22].mxu0 %v318_v8  ;;  %1790 = vmatprep.subr.bf16.mxu1 %v1759_v37 }
  0xf3   : > { %592 = vmatprep.mubr.f32.mxu0 %v321_v9  ;;  %1762 = vmatpush1.bf16.msra.mxu0 %v1761_v40 }
  0xf4   : > { %748 = vmatmul.mubr.f32.gmra.mrb[22].mxu1 %v318_v8  ;;  %1764 = vmatprep.subr.bf16.mxu0 %v1763_v43 }
  0xf5   : > { %753 = vmatprep.mubr.f32.mxu1 %v321_v9  ;;  %1806 = vmatpush1.bf16.msra.mxu1 %v1761_v40 }
  0xf6   : > { %593 = vmatmul.mubr.f32.gmra.mrb[24].mxu0 %v320_v10  ;;  %1791 = vmatprep.subr.bf16.mxu1 %v1763_v43 }
  0xf7   : > { %598 = vmatprep.mubr.f32.mxu0 %v323_v11  ;;  %1766 = vmatpush1.bf16.msra.mxu0 %v1765_v46 }
  0xf8   : > { %754 = vmatmul.mubr.f32.gmra.mrb[24].mxu1 %v320_v10  ;;  %1768 = vmatprep.subr.bf16.mxu0 %v1767_v49 }
  0xf9   : > { %759 = vmatprep.mubr.f32.mxu1 %v323_v11  ;;  %1807 = vmatpush1.bf16.msra.mxu1 %v1765_v46 }
  0xfa   : > { %599 = vmatmul.mubr.f32.gmra.mrb[26].mxu0 %v322_v12  ;;  %1792 = vmatprep.subr.bf16.mxu1 %v1767_v49 }
  0xfb   : > { %604 = vmatprep.mubr.f32.mxu0 %v325_v13  ;;  %1770 = vmatpush1.bf16.msra.mxu0 %v1769_v52 }
  0xfc   : > { %760 = vmatmul.mubr.f32.gmra.mrb[26].mxu1 %v322_v12  ;;  %1772 = vmatprep.subr.bf16.mxu0 %v1771_v55 }
  0xfd   : > { %765 = vmatprep.mubr.f32.mxu1 %v325_v13  ;;  %1808 = vmatpush1.bf16.msra.mxu1 %v1769_v52 }
  0xfe   : > { %605 = vmatmul.mubr.f32.gmra.mrb[28].mxu0 %v324_v14  ;;  %1793 = vmatprep.subr.bf16.mxu1 %v1771_v55 }
  0xff   : > { %610 = vmatprep.mubr.f32.mxu0 %v327_v15  ;;  %1774 = vmatpush1.bf16.msra.mxu0 %v1773_v58 }
 0x100   : > { %766 = vmatmul.mubr.f32.gmra.mrb[28].mxu1 %v324_v14  ;;  %1776 = vmatprep.subr.bf16.mxu0 %v1775_v61 }
 0x101   : > { %771 = vmatprep.mubr.f32.mxu1 %v327_v15  ;;  %1809 = vmatpush1.bf16.msra.mxu1 %v1773_v58 }
 0x102   : > { %611 = vmatmul.mubr.f32.gmra.mrb[30].mxu0 %v326_v16  ;;  %1794 = vmatprep.subr.bf16.mxu1 %v1775_v61 }
 0x103   : > { %1778 = vmatpush1.bf16.msra.mxu0 %v1777_v0 }
 0x104   : > { %772 = vmatmul.mubr.f32.gmra.mrb[30].mxu1 %v326_v16 }
 0x105   : > { %1810 = vmatpush1.bf16.msra.mxu1 %v1777_v0 }
 0x199   : > { %v2616_v1 = vpop.f32.mrb[0].mxu0 }
 0x19a   : > { %v1547_v2 = vmul.f32 -1.442695, %v2616_v1  ;;  %v2619_v3 = vpop.f32.mrb[1].mxu0 }
 0x19b   : > { %v1548_v4 = vmul.f32 -1.442695, %v2619_v3  ;;  %v2634_v13 = vpop.f32.mrb[0].mxu1 }
 0x19c   : > { %1897 = vpow2.f32 %v1547_v2  ;;  %v2636_v14 = vpop.f32.mrb[1].mxu1 }
 0x19d   : > { %1899 = vpow2.f32 %v1548_v4  ;;  %v2622_v5 = vpop.f32.mrb[2].mxu0 }
 0x19e   : > { %v1549_v6 = vmul.f32 -1.442695, %v2622_v5  ;;  %v2625_v7 = vpop.f32.mrb[3].mxu0 }
 0x19f   : > { %v1550_v8 = vmul.f32 -1.442695, %v2625_v7  ;;  %v2644_v22 = vpop.f32.mrb[2].mxu1 }
 0x1a0   : > { %1901 = vpow2.f32 %v1549_v6  ;;  %v2646_v24 = vpop.f32.mrb[3].mxu1 }
 0x1a1   : > { %1903 = vpow2.f32 %v1550_v8  ;;  %v2628_v9 = vpop.f32.mrb[4].mxu0 }
 0x1a2   : > { %v1551_v10 = vmul.f32 -1.442695, %v2628_v9  ;;  %v2631_v11 = vpop.f32.mrb[5].mxu0 }
 0x1a3   : > { %v1552_v12 = vmul.f32 -1.442695, %v2631_v11  ;;  %v2654_v32 = vpop.f32.mrb[4].mxu1 }
 0x1a4   : > { %1905 = vpow2.f32 %v1551_v10  ;;  %v2656_v34 = vpop.f32.mrb[5].mxu1 }
 0x1a5   : > { %1907 = vpow2.f32 %v1552_v12  ;;  %v2638_v15 = vpop.f32.mrb[6].mxu0 }
 0x1a6   : > { %v1898_v16 = vpop.eup %1897  ;;  %v1553_v17 = vmul.f32 -1.442695, %v2638_v15  ;;  %v2641_v18 = vpop.f32.mrb[7].mxu0 }
 0x1a7   : > { %v1900_v19 = vpop.eup %1899  ;;  %v874_v20 = vadd.f32 1.0, %v1898_v16  ;;  %v1554_v21 = vmul.f32 -1.442695, %v2641_v18  ;;  %v2664_v42 = vpop.f32.mrb[6].mxu1 }
 0x1a8   : > { %v875_v23 = vadd.f32 1.0, %v1900_v19  ;;  %1909 = vpow2.f32 %v1553_v17  ;;  %v2666_v44 = vpop.f32.mrb[7].mxu1 }
 0x1a9   : > { %1911 = vrcp.f32 %v874_v20  ;;  %v2648_v25 = vpop.f32.mrb[8].mxu0 }
 0x1aa   : > { %v1902_v26 = vpop.eup %1901  ;;  %1913 = vrcp.f32 %v875_v23  ;;  %v1555_v27 = vmul.f32 -1.442695, %v2648_v25  ;;  %v2651_v28 = vpop.f32.mrb[9].mxu0 }
 0x1ab   : > { %v1904_v29 = vpop.eup %1903  ;;  %v876_v30 = vadd.f32 1.0, %v1902_v26  ;;  %1915 = vpow2.f32 %v1554_v21  ;;  %v1556_v31 = vmul.f32 -1.442695, %v2651_v28  ;;  %v2674_v52 = vpop.f32.mrb[8].mxu1 }
 0x1ac   : > { %v877_v33 = vadd.f32 1.0, %v1904_v29  ;;  %1917 = vpow2.f32 %v1555_v27  ;;  %v2677_v55 = vpop.f32.mrb[9].mxu1 }
 0x1ad   : > { %1919 = vrcp.f32 %v876_v30  ;;  %v2658_v35 = vpop.f32.mrb[10].mxu0 }
 0x1ae   : > { %v1906_v36 = vpop.eup %1905  ;;  %1921 = vrcp.f32 %v877_v33  ;;  %v1557_v37 = vmul.f32 -1.442695, %v2658_v35  ;;  %v2661_v38 = vpop.f32.mrb[11].mxu0 }
 0x1af   : > { %v1908_v39 = vpop.eup %1907  ;;  %v878_v40 = vadd.f32 1.0, %v1906_v36  ;;  %1923 = vpow2.f32 %v1556_v31  ;;  %v1558_v41 = vmul.f32 -1.442695, %v2661_v38  ;;  %v2688_v6 = vpop.f32.mrb[10].mxu1 }
 0x1b0   : > { %v879_v43 = vadd.f32 1.0, %v1908_v39  ;;  %1925 = vpow2.f32 %v1557_v37  ;;  %v2691_v10 = vpop.f32.mrb[11].mxu1 }
 0x1b1   : > { %1927 = vrcp.f32 %v878_v40  ;;  %v2668_v45 = vpop.f32.mrb[12].mxu0 }
 0x1b2   : > { %v1910_v46 = vpop.eup %1909  ;;  %1929 = vrcp.f32 %v879_v43  ;;  %v1559_v47 = vmul.f32 -1.442695, %v2668_v45  ;;  %v2671_v48 = vpop.f32.mrb[13].mxu0 }
 0x1b3   : > { %v1912_v49 = vpop.eup %1911  ;;  %v880_v50 = vadd.f32 1.0, %v1910_v46  ;;  %1931 = vpow2.f32 %v1558_v41  ;;  %v1560_v51 = vmul.f32 -1.442695, %v2671_v48  ;;  %v2702_v27 = vpop.f32.mrb[12].mxu1 }
 0x1b4   : > { %v1914_v53 = vpop.eup %1913  ;;  %v970_v54 = vmul.f32 %v1912_v49, %v2616_v1  ;;  %1933 = vpow2.f32 %v1559_v47  ;;  %v2705_v31 = vpop.f32.mrb[13].mxu1 }
 0x1b5   : > { %v1916_v56 = vpop.eup %1915  ;;  %v971_v57 = vmul.f32 %v1914_v53, %v2619_v3  ;;  %1935 = vrcp.f32 %v880_v50  ;;  %v2680_v58 = vpop.f32.mrb[14].mxu0 }
 0x1b6   : > { %v1918_v59 = vpop.eup %1917  ;;  %v881_v60 = vadd.f32 1.0, %v1916_v56  ;;  %1937 = vpow2.f32 %v1560_v51  ;;  %v1002_v61 = vmul.f32 %v970_v54, %v2634_v13  ;;  %v1561_v62 = vmul.f32 -1.442695, %v2680_v58  ;;  %v2684_v63 = vpop.f32.mrb[15].mxu0 }
 0x1b7   : > { %v1920_v0 = vpop.eup %1919  ;;  %v882_v1 = vadd.f32 1.0, %v1918_v59  ;;  %v1003_v2 = vmul.f32 %v971_v57, %v2636_v14  ;;  %v1562_v4 = vmul.f32 -1.442695, %v2684_v63 }
 0x1b8   : > { %v1922_v3 = vpop.eup %1921  ;;  %v972_v8 = vmul.f32 %v1920_v0, %v2622_v5  ;;  %1939 = vrcp.f32 %v881_v60 }
 0x1b9   : > { %v1924_v12 = vpop.eup %1923  ;;  %v973_v13 = vmul.f32 %v1922_v3, %v2625_v7  ;;  %1941 = vrcp.f32 %v882_v1  ;;  %v2694_v16 = vpop.f32.mrb[16].mxu0  ;;  %1194 = vmatprep.mubr.f32.mxu0 %v1003_v2 }
 0x1ba   : > { %v1926_v17 = vpop.eup %1925  ;;  %v883_v19 = vadd.f32 1.0, %v1924_v12  ;;  %1943 = vpow2.f32 %v1561_v62  ;;  %v1004_v14 = vmul.f32 %v972_v8, %v2644_v22  ;;  %v1563_v20 = vmul.f32 -1.442695, %v2694_v16  ;;  %v2698_v21 = vpop.f32.mrb[17].mxu0  ;;  %1195 = vmatmul.mubr.f32.vlgmr.msra.gmra.mrb[32].mxu0 %v1002_v61 }
 0x1bb   : > { %v1928_v5 = vpop.eup %1927  ;;  %v884_v23 = vadd.f32 1.0, %v1926_v17  ;;  %1945 = vpow2.f32 %v1562_v4  ;;  %v1005_v26 = vmul.f32 %v973_v13, %v2646_v24  ;;  %v1564_v7 = vmul.f32 -1.442695, %v2698_v21 }
 0x1bc   : > { %v1930_v29 = vpop.eup %1929  ;;  %v974_v30 = vmul.f32 %v1928_v5, %v2628_v9  ;;  %1947 = vrcp.f32 %v883_v19 }
 0x1bd   : > { %v1932_v22 = vpop.eup %1931  ;;  %v975_v33 = vmul.f32 %v1930_v29, %v2631_v11  ;;  %1949 = vrcp.f32 %v884_v23  ;;  %v2708_v36 = vpop.f32.mrb[18].mxu0  ;;  %1200 = vmatprep.mubr.f32.mxu0 %v1005_v26 }
 0x1be   : > { %v1934_v37 = vpop.eup %1933  ;;  %v885_v39 = vadd.f32 1.0, %v1932_v22  ;;  %1951 = vpow2.f32 %v1563_v20  ;;  %v1006_v24 = vmul.f32 %v974_v30, %v2654_v32  ;;  %v1565_v40 = vmul.f32 -1.442695, %v2708_v36  ;;  %v2712_v41 = vpop.f32.mrb[19].mxu0  ;;  %1201 = vmatmul.mubr.f32.gmra.mrb[34].mxu0 %v1004_v14 }
 0x1bf   : > { %v1936_v9 = vpop.eup %1935  ;;  %v886_v43 = vadd.f32 1.0, %v1934_v37  ;;  %1953 = vpow2.f32 %v1564_v7  ;;  %v1007_v46 = vmul.f32 %v975_v33, %v2656_v34  ;;  %v2715_v11 = vpop.f32.mrb[14].mxu1  ;;  %v1566_v50 = vmul.f32 -1.442695, %v2712_v41 }
 0x1c0   : > { %v1938_v47 = vpop.eup %1937  ;;  %v976_v49 = vmul.f32 %v1936_v9, %v2638_v15  ;;  %1955 = vrcp.f32 %v885_v39  ;;  %v2719_v51 = vpop.f32.mrb[15].mxu1 }
 0x1c1   : > { %1957 = vrcp.f32 %v886_v43  ;;  %v887_v32 = vadd.f32 1.0, %v1938_v47  ;;  %v2721_v53 = vpop.f32.mrb[20].mxu0  ;;  %1206 = vmatprep.mubr.f32.mxu0 %v1007_v46  ;;  %v2729_v61 = vpop.f32.mrb[16].mxu1 }
 0x1c2   : > { %v1940_v54 = vpop.eup %1939  ;;  %1959 = vpow2.f32 %v1565_v40  ;;  %v1008_v56 = vmul.f32 %v976_v49, %v2664_v42  ;;  %v1567_v34 = vmul.f32 -1.442695, %v2721_v53  ;;  %v2725_v57 = vpop.f32.mrb[21].mxu0  ;;  %1207 = vmatmul.mubr.f32.gmra.mrb[36].mxu0 %v1006_v24 }
 0x1c3   : > { %v1942_v15 = vpop.eup %1941  ;;  %v977_v59 = vmul.f32 %v1940_v54, %v2641_v18  ;;  %1961 = vrcp.f32 %v887_v32  ;;  %v1568_v60 = vmul.f32 -1.442695, %v2725_v57  ;;  %v2732_v1 = vpop.f32.mrb[17].mxu1 }
 0x1c4   : > { %v1944_v62 = vpop.eup %1943  ;;  %v978_v0 = vmul.f32 %v1942_v15, %v2648_v25  ;;  %1963 = vpow2.f32 %v1566_v50  ;;  %v2743_v20 = vpop.f32.mrb[18].mxu1 }
 0x1c5   : > { %v1946_v42 = vpop.eup %1945  ;;  %v888_v2 = vadd.f32 1.0, %v1944_v62  ;;  %1965 = vpow2.f32 %v1567_v34  ;;  %v1009_v4 = vmul.f32 %v977_v59, %v2666_v44  ;;  %v2735_v3 = vpop.f32.mrb[22].mxu0 }
 0x1c6   : > { %v1948_v8 = vpop.eup %1947  ;;  %v889_v18 = vadd.f32 1.0, %v1946_v42  ;;  %1967 = vpow2.f32 %v1568_v60  ;;  %v1010_v12 = vmul.f32 %v978_v0, %v2674_v52  ;;  %v1569_v13 = vmul.f32 -1.442695, %v2735_v3  ;;  %v2739_v17 = vpop.f32.mrb[23].mxu0 }
 0x1c7   : > { %v1950_v25 = vpop.eup %1949  ;;  %v979_v19 = vmul.f32 %v1948_v8, %v2651_v28  ;;  %1969 = vrcp.f32 %v888_v2  ;;  %1212 = vmatprep.mubr.f32.mxu0 %v1009_v4  ;;  %v1570_v14 = vmul.f32 -1.442695, %v2739_v17  ;;  %v2746_v23 = vpop.f32.mrb[19].mxu1 }
 0x1c8   : > { %v1952_v44 = vpop.eup %1951  ;;  %v980_v5 = vmul.f32 %v1950_v25, %v2658_v35  ;;  %1971 = vrcp.f32 %v889_v18  ;;  %1213 = vmatmul.mubr.f32.gmra.mrb[38].mxu0 %v1008_v56  ;;  %v2757_v40 = vpop.f32.mrb[20].mxu1 }
 0x1c9   : > { %v1954_v52 = vpop.eup %1953  ;;  %v890_v26 = vadd.f32 1.0, %v1952_v44  ;;  %1973 = vpow2.f32 %v1569_v13  ;;  %v1011_v7 = vmul.f32 %v979_v19, %v2677_v55  ;;  %v2749_v29 = vpop.f32.mrb[24].mxu0 }
 0x1ca   : > { %v1956_v28 = vpop.eup %1955  ;;  %v891_v30 = vadd.f32 1.0, %v1954_v52  ;;  %1975 = vpow2.f32 %v1570_v14  ;;  %v1012_v22 = vmul.f32 %v980_v5, %v2688_v6  ;;  %v1571_v33 = vmul.f32 -1.442695, %v2749_v29  ;;  %v2753_v37 = vpop.f32.mrb[25].mxu0 }
 0x1cb   : > { %v1958_v35 = vpop.eup %1957  ;;  %v981_v39 = vmul.f32 %v1956_v28, %v2661_v38  ;;  %1977 = vrcp.f32 %v890_v26  ;;  %1218 = vmatprep.mubr.f32.mxu0 %v1011_v7  ;;  %v1572_v24 = vmul.f32 -1.442695, %v2753_v37  ;;  %v2760_v43 = vpop.f32.mrb[21].mxu1 }
 0x1cc   : > { %v1960_v55 = vpop.eup %1959  ;;  %v982_v9 = vmul.f32 %v1958_v35, %v2668_v45  ;;  %1979 = vrcp.f32 %v891_v30  ;;  %1219 = vmatmul.mubr.f32.gmra.mrb[40].mxu0 %v1010_v12  ;;  %v2770_v15 = vpop.f32.mrb[22].mxu1 }
 0x1cd   : > { %v1962_v6 = vpop.eup %1961  ;;  %v892_v46 = vadd.f32 1.0, %v1960_v55  ;;  %1981 = vpow2.f32 %v1571_v33  ;;  %v1013_v47 = vmul.f32 %v981_v39, %v2691_v10  ;;  %v2763_v49 = vpop.f32.mrb[26].mxu0 }
 0x1ce   : > { %v1964_v38 = vpop.eup %1963  ;;  %v983_v50 = vmul.f32 %v1962_v6, %v2671_v48  ;;  %1983 = vpow2.f32 %v1572_v24  ;;  %v1014_v32 = vmul.f32 %v982_v9, %v2702_v27  ;;  %v1573_v54 = vmul.f32 -1.442695, %v2763_v49  ;;  %v2768_v45 = vpop.f32.mrb[27].mxu0 }
 0x1cf   : > { %v1966_v56 = vpop.eup %1965  ;;  %1985 = vrcp.f32 %v892_v46  ;;  %v893_v34 = vadd.f32 1.0, %v1964_v38  ;;  %1224 = vmatprep.mubr.f32.mxu0 %v1013_v47  ;;  %v1574_v48 = vmul.f32 -1.442695, %v2768_v45  ;;  %v2774_v62 = vpop.f32.mrb[23].mxu1 }
 0x1d0   : > { %v1968_v59 = vpop.eup %1967  ;;  %v894_v10 = vadd.f32 1.0, %v1966_v56  ;;  %1987 = vpow2.f32 %v1573_v54  ;;  %v1015_v60 = vmul.f32 %v983_v50, %v2705_v31  ;;  %1225 = vmatmul.mubr.f32.gmra.mrb[42].mxu0 %v1012_v22  ;;  %v2783_v13 = vpop.f32.mrb[24].mxu1 }
 0x1d1   : > { %v1970_v27 = vpop.eup %1969  ;;  %1989 = vrcp.f32 %v893_v34  ;;  %v895_v0 = vadd.f32 1.0, %v1968_v59  ;;  %v2776_v42 = vpop.f32.mrb[28].mxu0 }
 0x1d2   : > { %v1972_v2 = vpop.eup %1971  ;;  %v984_v4 = vmul.f32 %v1970_v27, %v2680_v58  ;;  %1991 = vrcp.f32 %v894_v10  ;;  %v1575_v8 = vmul.f32 -1.442695, %v2776_v42  ;;  %1230 = vmatprep.mubr.f32.mxu0 %v1015_v60  ;;  %v2780_v18 = vpop.f32.mrb[29].mxu0 }
 0x1d3   : > { %v1974_v31 = vpop.eup %1973  ;;  %v985_v12 = vmul.f32 %v1972_v2, %v2684_v63  ;;  %1993 = vrcp.f32 %v895_v0  ;;  %v1576_v44 = vmul.f32 -1.442695, %v2780_v18  ;;  %v2787_v58 = vpop.f32.mrb[25].mxu1 }
 0x1d4   : > { %v1976_v25 = vpop.eup %1975  ;;  %v896_v19 = vadd.f32 1.0, %v1974_v31  ;;  %1995 = vpow2.f32 %v1574_v48  ;;  %v1016_v14 = vmul.f32 %v984_v4, %v2715_v11  ;;  %1231 = vmatmul.mubr.f32.gmra.mrb[44].mxu0 %v1014_v32  ;;  %v2797_v35 = vpop.f32.mrb[26].mxu1 }
 0x1d5   : > { %v1978_v5 = vpop.eup %1977  ;;  %v897_v52 = vadd.f32 1.0, %v1976_v25  ;;  %1997 = vpow2.f32 %v1575_v8  ;;  %v1017_v26 = vmul.f32 %v985_v12, %v2719_v51  ;;  %v2790_v7 = vpop.f32.mrb[30].mxu0 }
 0x1d6   : > { %v1980_v63 = vpop.eup %1979  ;;  %v986_v28 = vmul.f32 %v1978_v5, %v2694_v16  ;;  %1999 = vrcp.f32 %v896_v19  ;;  %v1577_v30 = vmul.f32 -1.442695, %v2790_v7  ;;  %v2794_v22 = vpop.f32.mrb[31].mxu0 }
 0x1d7   : > { %v1982_v11 = vpop.eup %1981  ;;  %v987_v33 = vmul.f32 %v1980_v63, %v2698_v21  ;;  %2001 = vrcp.f32 %v897_v52  ;;  %1236 = vmatprep.mubr.f32.mxu0 %v1017_v26  ;;  %v1578_v55 = vmul.f32 -1.442695, %v2794_v22  ;;  %v2801_v16 = vpop.f32.mrb[27].mxu1 }
 0x1d8   : > { %v1984_v39 = vpop.eup %1983  ;;  %v898_v24 = vadd.f32 1.0, %v1982_v11  ;;  %2003 = vpow2.f32 %v1576_v44  ;;  %v1018_v51 = vmul.f32 %v986_v28, %v2729_v61  ;;  %1237 = vmatmul.mubr.f32.gmra.mrb[46].mxu0 %v1016_v14  ;;  %v767_v32 = vpop.f32.mrb[28].mxu1 }
 0x1d9   : > { %v1986_v9 = vpop.eup %1985  ;;  %v899_v6 = vadd.f32 1.0, %v1984_v39  ;;  %2005 = vpow2.f32 %v1577_v30  ;;  %v1019_v46 = vmul.f32 %v987_v33, %v2732_v1  ;;  %v769_v34 = vpop.f32.mrb[29].mxu1 }
 0x1da   : > { %v1988_v21 = vpop.eup %1987  ;;  %v988_v47 = vmul.f32 %v1986_v9, %v2708_v36  ;;  %2007 = vrcp.f32 %v898_v24  ;;  %v773_v2 = vpop.f32.mrb[30].mxu1 }
 0x1db   : > { %v1990_v38 = vpop.eup %1989  ;;  %2009 = vrcp.f32 %v899_v6  ;;  %v900_v50 = vadd.f32 1.0, %v1988_v21  ;;  %1242 = vmatprep.mubr.f32.mxu1 %v1019_v46  ;;  %v775_v8 = vpop.f32.mrb[31].mxu1 }
 0x1dc   : > { %v1992_v61 = vpop.eup %1991  ;;  %v989_v54 = vmul.f32 %v1990_v38, %v2712_v41  ;;  %2011 = vpow2.f32 %v1578_v55  ;;  %v1020_v56 = vmul.f32 %v988_v47, %v2743_v20  ;;  %1243 = vmatmul.mubr.f32.vlgmr.msra.gmra.mrb[32].mxu1 %v1018_v51  ;;  %v1036_v47 = vld [vmem:[#allocation2 + $0x10] sm:$0xff] }
 0x1dd   : > { %v1994_v59 = vpop.eup %1993  ;;  %v990_v1 = vmul.f32 %v1992_v61, %v2721_v53  ;;  %2013 = vrcp.f32 %v900_v50 }
 0x1de   : > { %v1996_v10 = vpop.eup %1995  ;;  %v991_v36 = vmul.f32 %v1994_v59, %v2725_v57  ;;  %v1021_v60 = vmul.f32 %v989_v54, %v2746_v23  ;;  %v1039_v54 = vld [vmem:[#allocation2 + $0x28] sm:$0xff] }
 0x1df   : > { %v1998_v48 = vpop.eup %1997  ;;  %v901_v27 = vadd.f32 1.0, %v1996_v10  ;;  %v1022_v0 = vmul.f32 %v990_v1, %v2757_v40  ;;  %v1040_v10 = vld [vmem:[#allocation2 + $0x30] sm:$0xff] }
 0x1e0   : > { %v2000_v41 = vpop.eup %1999  ;;  %v902_v4 = vadd.f32 1.0, %v1998_v48  ;;  %v1023_v20 = vmul.f32 %v991_v36, %v2760_v43  ;;  %1248 = vmatprep.mubr.f32.mxu1 %v1021_v60  ;;  %v1041_v36 = vld [vmem:[#allocation2 + $0x38] sm:$0xff] }
 0x1e1   : > { %v2002_v31 = vpop.eup %2001  ;;  %v992_v53 = vmul.f32 %v2000_v41, %v2735_v3  ;;  %2015 = vrcp.f32 %v901_v27  ;;  %1249 = vmatmul.mubr.f32.gmra.mrb[34].mxu1 %v1020_v56  ;;  %v1043_v41 = vld [vmem:[#allocation2 + $0x48] sm:$0xff] }
 0x1e2   : > { %v2004_v12 = vpop.eup %2003  ;;  %v993_v57 = vmul.f32 %v2002_v31, %v2739_v17  ;;  %2017 = vrcp.f32 %v902_v4  ;;  %1254 = vmatprep.mubr.f32.mxu1 %v1023_v20 }
 0x1e3   : > { %v2006_v23 = vpop.eup %2005  ;;  %v903_v25 = vadd.f32 1.0, %v2004_v12  ;;  %v1024_v40 = vmul.f32 %v992_v53, %v2770_v15  ;;  %v1044_v53 = vld [vmem:[#allocation2 + $0x50] sm:$0xff]  ;;  %v1045_v12 = vld [vmem:[#allocation2 + $0x58] sm:$0xff] }
 0x1e4   : > { %v2008_v19 = vpop.eup %2007  ;;  %v904_v14 = vadd.f32 1.0, %v2006_v23  ;;  %v1025_v43 = vmul.f32 %v993_v57, %v2774_v62 }
 0x1e5   : > { %v2010_v44 = vpop.eup %2009  ;;  %v994_v5 = vmul.f32 %v2008_v19, %v2749_v29  ;;  %2019 = vrcp.f32 %v903_v25  ;;  %1255 = vmatmul.mubr.f32.gmra.mrb[36].mxu1 %v1022_v0  ;;  %v1046_v19 = vld [vmem:[#allocation2 + $0x60] sm:$0xff] }
 0x1e6   : > { %v2012_v3 = vpop.eup %2011  ;;  %v995_v52 = vmul.f32 %v2010_v44, %v2753_v37  ;;  %2021 = vrcp.f32 %v904_v14  ;;  %1260 = vmatprep.mubr.f32.mxu1 %v1025_v43  ;;  %v1047_v14 = vld [vmem:[#allocation2 + $0x68] sm:$0xff] }
 0x1e7   : > { %v2014_v17 = vpop.eup %2013  ;;  %v905_v26 = vadd.f32 1.0, %v2012_v3  ;;  %v1026_v63 = vmul.f32 %v994_v5, %v2783_v13 }
 0x1e8   : > { %v996_v15 = vmul.f32 %v2014_v17, %v2763_v49  ;;  %v1027_v28 = vmul.f32 %v995_v52, %v2787_v58  ;;  %v1048_v52 = vld [vmem:[#allocation2 + $0x70] sm:$0xff]  ;;  %v1049_v17 = vld [vmem:[#allocation2 + $0x78] sm:$0xff] }
 0x1e9   : > { %2023 = vrcp.f32 %v905_v26  ;;  %1261 = vmatmul.mubr.f32.gmra.mrb[38].mxu1 %v1024_v40 }
 0x1ea   : > { %v1028_v62 = vmul.f32 %v996_v15, %v2797_v35  ;;  %1266 = vmatprep.mubr.f32.mxu1 %v1027_v28 }
 0x1eb   : > { %v2016_v29 = vpop.eup %2015 }
 0x1ec   : > { %v2018_v30 = vpop.eup %2017  ;;  %v997_v11 = vmul.f32 %v2016_v29, %v2768_v45  ;;  %v1051_v29 = vld [vmem:[#allocation2 + $0x88] sm:$0xff] }
 0x1ed   : > { %v998_v37 = vmul.f32 %v2018_v30, %v2776_v42  ;;  %1267 = vmatmul.mubr.f32.gmra.mrb[40].mxu1 %v1026_v63  ;;  %v1034_v42 = vld [vmem:[#allocation2] sm:$0xff] }
 0x1ee   : > { %v1029_v33 = vmul.f32 %v997_v11, %v2801_v16  ;;  %v1035_v16 = vld [vmem:[#allocation2 + $0x8] sm:$0xff] }
 0x1ef   : > { %v2020_v39 = vpop.eup %2019  ;;  %v1030_v13 = vmul.f32 %v998_v37, %v767_v32 }
 0x1f0   : > { %v2022_v24 = vpop.eup %2021  ;;  %v999_v49 = vmul.f32 %v2020_v39, %v2780_v18  ;;  %1272 = vmatprep.mubr.f32.mxu1 %v1029_v33  ;;  %v1052_v39 = vld [vmem:[#allocation2 + $0x90] sm:$0xff] }
 0x1f1   : > { %v1000_v58 = vmul.f32 %v2022_v24, %v2790_v7  ;;  %1273 = vmatmul.mubr.f32.gmra.mrb[42].mxu1 %v1028_v62  ;;  %v1037_v7 = vld [vmem:[#allocation2 + $0x18] sm:$0xff]  ;;  %v1050_v62 = vld [vmem:[#allocation2 + $0x80] sm:$0xff] }
 0x1f2   : > { %v1031_v35 = vmul.f32 %v999_v49, %v769_v34 }
 0x1f3   : > { %v2024_v51 = vpop.eup %2023  ;;  %v1032_v55 = vmul.f32 %v1000_v58, %v773_v2  ;;  %v1042_v2 = vld [vmem:[#allocation2 + $0x40] sm:$0xff] }
 0x1f4   : > { %v1001_v9 = vmul.f32 %v2024_v51, %v2794_v22  ;;  %1278 = vmatprep.mubr.f32.mxu1 %v1031_v35  ;;  %v1038_v22 = vld [vmem:[#allocation2 + $0x20] sm:$0xff] }
 0x1f5   : > { %1279 = vmatmul.mubr.f32.gmra.mrb[44].mxu1 %v1030_v13  ;;  %v1053_v13 = vld [vmem:[#allocation2 + $0x98] sm:$0xff]  ;;  %v1054_v51 = vld [vmem:[#allocation2 + $0xa0] sm:$0xff] }
 0x1f6   : > { %v1033_v45 = vmul.f32 %v1001_v9, %v775_v8 }
 0x1f8   : > { %1284 = vmatprep.mubr.f32.mxu1 %v1033_v45 }
 0x1f9   : > { %1285 = vmatmul.mubr.f32.gmra.mrb[46].mxu1 %v1032_v55  ;;  %v1055_v55 = vld [vmem:[#allocation2 + $0xa8] sm:$0xff] }
 0x28d   : > { %v1196_v6 = vpop.f32.mrb[32].mxu0 }
 0x28e   : > { %v1291_v46 = vadd.f32 %v1196_v6, %v1034_v42  ;;  %v1198_v21 = vpop.f32.mrb[33].mxu0  ;;  %v1056_v6 = vld [vmem:[#allocation2 + $0xb0] sm:$0xff] }
 0x28f   : > { %v1292_v18 = vadd.f32 %v1198_v21, %v1035_v16 }
 0x290   : > { %1323 = vst [vmem:[#allocation2] sm:$0xff] %v1291_v46  ;;  %v1057_v46 = vld [vmem:[#allocation2 + $0xb8] sm:$0xff] }
 0x291   : > { %1324 = vst [vmem:[#allocation2 + $0x8] sm:$0xff] %v1292_v18  ;;  %v1202_v38 = vpop.f32.mrb[34].mxu0 }
 0x292   : > { %v1293_v50 = vadd.f32 %v1202_v38, %v1036_v47  ;;  %v1204_v32 = vpop.f32.mrb[35].mxu0  ;;  %v1058_v38 = vld [vmem:[#allocation2 + $0xc0] sm:$0xff] }
 0x293   : > { %v1294_v61 = vadd.f32 %v1204_v32, %v1037_v7 }
 0x294   : > { %1325 = vst [vmem:[#allocation2 + $0x10] sm:$0xff] %v1293_v50  ;;  %v1059_v50 = vld [vmem:[#allocation2 + $0xc8] sm:$0xff] }
 0x295   : > { %1326 = vst [vmem:[#allocation2 + $0x18] sm:$0xff] %v1294_v61  ;;  %v1208_v56 = vpop.f32.mrb[36].mxu0 }
 0x296   : > { %v1295_v34 = vadd.f32 %v1208_v56, %v1038_v22  ;;  %v1210_v59 = vpop.f32.mrb[37].mxu0  ;;  %v1060_v56 = vld [vmem:[#allocation2 + $0xd0] sm:$0xff] }
 0x297   : > { %v1296_v1 = vadd.f32 %v1210_v59, %v1039_v54 }
 0x298   : > { %1327 = vst [vmem:[#allocation2 + $0x20] sm:$0xff] %v1295_v34  ;;  %v1061_v34 = vld [vmem:[#allocation2 + $0xd8] sm:$0xff] }
 0x299   : > { %1328 = vst [vmem:[#allocation2 + $0x28] sm:$0xff] %v1296_v1 }
 0x29b   : > { %v1214_v60 = vpop.f32.mrb[38].mxu0 }
 0x29c   : > { %v1297_v48 = vadd.f32 %v1214_v60, %v1040_v10  ;;  %v1216_v27 = vpop.f32.mrb[39].mxu0  ;;  %v1062_v60 = vld [vmem:[#allocation2 + $0xe0] sm:$0xff] }
 0x29d   : > { %v1298_v0 = vadd.f32 %v1216_v27, %v1041_v36 }
 0x29e   : > { %1329 = vst [vmem:[#allocation2 + $0x30] sm:$0xff] %v1297_v48  ;;  %v1063_v48 = vld [vmem:[#allocation2 + $0xe8] sm:$0xff] }
 0x29f   : > { %1330 = vst [vmem:[#allocation2 + $0x38] sm:$0xff] %v1298_v0  ;;  %v1220_v4 = vpop.f32.mrb[40].mxu0 }
 0x2a0   : > { %v1299_v20 = vadd.f32 %v1220_v4, %v1042_v2  ;;  %v1222_v8 = vpop.f32.mrb[41].mxu0  ;;  %v1064_v4 = vld [vmem:[#allocation2 + $0xf0] sm:$0xff] }
 0x2a1   : > { %v1300_v31 = vadd.f32 %v1222_v8, %v1043_v41 }
 0x2a2   : > { %1331 = vst [vmem:[#allocation2 + $0x40] sm:$0xff] %v1299_v20  ;;  %v1065_v20 = vld [vmem:[#allocation2 + $0xf8] sm:$0xff] }
 0x2a3   : > { %1332 = vst [vmem:[#allocation2 + $0x48] sm:$0xff] %v1300_v31  ;;  %v1226_v57 = vpop.f32.mrb[42].mxu0 }
 0x2a4   : > { %v1301_v23 = vadd.f32 %v1226_v57, %v1044_v53  ;;  %v1228_v25 = vpop.f32.mrb[43].mxu0  ;;  %v1359_v57 = vld [vmem:[#allocation2] sm:$0xff] (!%p1579_p0) }
 0x2a5   : > { %v1302_v40 = vadd.f32 %v1228_v25, %v1045_v12  ;;  %v1361_v25 = vld [vmem:[#allocation2 + $0x10] sm:$0xff] (!%p1579_p0)  ;;  %1391 = vst [vmem:[#allocation9] sm:$0xff] (!%p1579_p0), %v1359_v57 }
 0x2a6   : > { %1333 = vst [vmem:[#allocation2 + $0x50] sm:$0xff] %v1301_v23  ;;  %v1360_v23 = vld [vmem:[#allocation2 + $0x8] sm:$0xff] (!%p1579_p0)  ;;  %1393 = vst [vmem:[#allocation9 + $0x10] sm:$0xff] (!%p1579_p0), %v1361_v25 }
 0x2a7   : > { %1334 = vst [vmem:[#allocation2 + $0x58] sm:$0xff] %v1302_v40  ;;  %v1232_v43 = vpop.f32.mrb[44].mxu0  ;;  %1392 = vst [vmem:[#allocation9 + $0x8] sm:$0xff] (!%p1579_p0), %v1360_v23  ;;  %v1362_v40 = vld [vmem:[#allocation2 + $0x18] sm:$0xff] (!%p1579_p0) }
 0x2a8   : > { %v1303_v44 = vadd.f32 %v1232_v43, %v1046_v19  ;;  %v1234_v5 = vpop.f32.mrb[45].mxu0  ;;  %v1363_v19 = vld [vmem:[#allocation2 + $0x20] sm:$0xff] (!%p1579_p0)  ;;  %1394 = vst [vmem:[#allocation9 + $0x18] sm:$0xff] (!%p1579_p0), %v1362_v40  ;;  %v1365_v43 = vld [vmem:[#allocation2 + $0x30] sm:$0xff] (!%p1579_p0) }
 0x2a9   : > { %v1304_v3 = vadd.f32 %v1234_v5, %v1047_v14  ;;  %v1364_v14 = vld [vmem:[#allocation2 + $0x28] sm:$0xff] (!%p1579_p0)  ;;  %1395 = vst [vmem:[#allocation9 + $0x20] sm:$0xff] (!%p1579_p0), %v1363_v19  ;;  %v1367_v5 = vld [vmem:[#allocation2 + $0x40] sm:$0xff] (!%p1579_p0)  ;;  %1397 = vst [vmem:[#allocation9 + $0x30] sm:$0xff] (!%p1579_p0), %v1365_v43 }
 0x2aa   : > { %1335 = vst [vmem:[#allocation2 + $0x60] sm:$0xff] %v1303_v44  ;;  %1396 = vst [vmem:[#allocation9 + $0x28] sm:$0xff] (!%p1579_p0), %v1364_v14  ;;  %v1366_v44 = vld [vmem:[#allocation2 + $0x38] sm:$0xff] (!%p1579_p0) }
 0x2ab   : > { %1336 = vst [vmem:[#allocation2 + $0x68] sm:$0xff] %v1304_v3  ;;  %v1238_v26 = vpop.f32.mrb[46].mxu0  ;;  %1398 = vst [vmem:[#allocation9 + $0x38] sm:$0xff] (!%p1579_p0), %v1366_v44  ;;  %v1368_v3 = vld [vmem:[#allocation2 + $0x48] sm:$0xff] (!%p1579_p0) }
 0x2ac   : > { %v1305_v63 = vadd.f32 %v1238_v26, %v1048_v52  ;;  %v1240_v15 = vpop.f32.mrb[47].mxu0  ;;  %1399 = vst [vmem:[#allocation9 + $0x40] sm:$0xff] (!%p1579_p0), %v1367_v5  ;;  %1400 = vst [vmem:[#allocation9 + $0x48] sm:$0xff] (!%p1579_p0), %v1368_v3 }
 0x2ad   : > { %v1306_v28 = vadd.f32 %v1240_v15, %v1049_v17  ;;  %v1369_v52 = vld [vmem:[#allocation2 + $0x50] sm:$0xff] (!%p1579_p0) }
 0x2ae   : > { %1337 = vst [vmem:[#allocation2 + $0x70] sm:$0xff] %v1305_v63  ;;  %v1370_v17 = vld [vmem:[#allocation2 + $0x58] sm:$0xff] (!%p1579_p0)  ;;  %1401 = vst [vmem:[#allocation9 + $0x50] sm:$0xff] (!%p1579_p0), %v1369_v52 }
 0x2af   : > { %1338 = vst [vmem:[#allocation2 + $0x78] sm:$0xff] %v1306_v28  ;;  %v1244_v30 = vpop.f32.mrb[32].mxu1  ;;  %1402 = vst [vmem:[#allocation9 + $0x58] sm:$0xff] (!%p1579_p0), %v1370_v17 }
 0x2b0   : > { %v1307_v11 = vadd.f32 %v1244_v30, %v1050_v62  ;;  %v1246_v37 = vpop.f32.mrb[33].mxu1 }
 0x2b1   : > { %v1308_v33 = vadd.f32 %v1246_v37, %v1051_v29  ;;  %v1371_v26 = vld [vmem:[#allocation2 + $0x60] sm:$0xff] (!%p1579_p0) }
 0x2b2   : > { %1339 = vst [vmem:[#allocation2 + $0x80] sm:$0xff] %v1307_v11  ;;  %v1372_v63 = vld [vmem:[#allocation2 + $0x68] sm:$0xff] (!%p1579_p0)  ;;  %1403 = vst [vmem:[#allocation9 + $0x60] sm:$0xff] (!%p1579_p0), %v1371_v26 }
 0x2b3   : > { %1340 = vst [vmem:[#allocation2 + $0x88] sm:$0xff] %v1308_v33  ;;  %1404 = vst [vmem:[#allocation9 + $0x68] sm:$0xff] (!%p1579_p0), %v1372_v63 }
 0x2b4   : > { %v1250_v24 = vpop.f32.mrb[34].mxu1 }
 0x2b5   : > { %v1309_v49 = vadd.f32 %v1250_v24, %v1052_v39  ;;  %v1252_v58 = vpop.f32.mrb[35].mxu1  ;;  %v1373_v15 = vld [vmem:[#allocation2 + $0x70] sm:$0xff] (!%p1579_p0) }
 0x2b6   : > { %v1310_v35 = vadd.f32 %v1252_v58, %v1053_v13  ;;  %1405 = vst [vmem:[#allocation9 + $0x70] sm:$0xff] (!%p1579_p0), %v1373_v15  ;;  %v1374_v28 = vld [vmem:[#allocation2 + $0x78] sm:$0xff] (!%p1579_p0) }
 0x2b7   : > { %1341 = vst [vmem:[#allocation2 + $0x90] sm:$0xff] %v1309_v49  ;;  %1406 = vst [vmem:[#allocation9 + $0x78] sm:$0xff] (!%p1579_p0), %v1374_v28 }
 0x2b8   : > { %1342 = vst [vmem:[#allocation2 + $0x98] sm:$0xff] %v1310_v35  ;;  %v1256_v9 = vpop.f32.mrb[36].mxu1 }
 0x2b9   : > { %v1311_v45 = vadd.f32 %v1256_v9, %v1054_v51  ;;  %v1258_v42 = vpop.f32.mrb[37].mxu1  ;;  %v1375_v62 = vld [vmem:[#allocation2 + $0x80] sm:$0xff] (!%p1579_p0) }
 0x2ba   : > { %v1312_v16 = vadd.f32 %v1258_v42, %v1055_v55  ;;  %v1376_v29 = vld [vmem:[#allocation2 + $0x88] sm:$0xff] (!%p1579_p0)  ;;  %1407 = vst [vmem:[#allocation9 + $0x80] sm:$0xff] (!%p1579_p0), %v1375_v62 }
 0x2bb   : > { %1343 = vst [vmem:[#allocation2 + $0xa0] sm:$0xff] %v1311_v45  ;;  %1408 = vst [vmem:[#allocation9 + $0x88] sm:$0xff] (!%p1579_p0), %v1376_v29 }
 0x2bc   : > { %1344 = vst [vmem:[#allocation2 + $0xa8] sm:$0xff] %v1312_v16  ;;  %v1262_v21 = vpop.f32.mrb[38].mxu1 }
 0x2bd   : > { %v1313_v18 = vadd.f32 %v1262_v21, %v1056_v6  ;;  %v1264_v47 = vpop.f32.mrb[39].mxu1 }
 0x2be   : > { %v1314_v7 = vadd.f32 %v1264_v47, %v1057_v46  ;;  %v1377_v30 = vld [vmem:[#allocation2 + $0x90] sm:$0xff] (!%p1579_p0) }
 0x2bf   : > { %1345 = vst [vmem:[#allocation2 + $0xb0] sm:$0xff] %v1313_v18  ;;  %v1378_v11 = vld [vmem:[#allocation2 + $0x98] sm:$0xff] (!%p1579_p0)  ;;  %1409 = vst [vmem:[#allocation9 + $0x90] sm:$0xff] (!%p1579_p0), %v1377_v30 }
 0x2c0   : > { %1346 = vst [vmem:[#allocation2 + $0xb8] sm:$0xff] %v1314_v7  ;;  %v1268_v32 = vpop.f32.mrb[40].mxu1  ;;  %1410 = vst [vmem:[#allocation9 + $0x98] sm:$0xff] (!%p1579_p0), %v1378_v11 }
 0x2c1   : > { %v1315_v61 = vadd.f32 %v1268_v32, %v1058_v38  ;;  %v1270_v22 = vpop.f32.mrb[41].mxu1 }
 0x2c2   : > { %v1316_v54 = vadd.f32 %v1270_v22, %v1059_v50  ;;  %v1379_v37 = vld [vmem:[#allocation2 + $0xa0] sm:$0xff] (!%p1579_p0) }
 0x2c3   : > { %1347 = vst [vmem:[#allocation2 + $0xc0] sm:$0xff] %v1315_v61  ;;  %1411 = vst [vmem:[#allocation9 + $0xa0] sm:$0xff] (!%p1579_p0), %v1379_v37  ;;  %v1380_v33 = vld [vmem:[#allocation2 + $0xa8] sm:$0xff] (!%p1579_p0) }
 0x2c4   : > { %1348 = vst [vmem:[#allocation2 + $0xc8] sm:$0xff] %v1316_v54  ;;  %v1274_v59 = vpop.f32.mrb[42].mxu1  ;;  %1412 = vst [vmem:[#allocation9 + $0xa8] sm:$0xff] (!%p1579_p0), %v1380_v33 }
 0x2c5   : > { %v1317_v1 = vadd.f32 %v1274_v59, %v1060_v56  ;;  %v1276_v10 = vpop.f32.mrb[43].mxu1 }
 0x2c6   : > { %v1318_v36 = vadd.f32 %v1276_v10, %v1061_v34  ;;  %v1381_v39 = vld [vmem:[#allocation2 + $0xb0] sm:$0xff] (!%p1579_p0) }
 0x2c7   : > { %1349 = vst [vmem:[#allocation2 + $0xd0] sm:$0xff] %v1317_v1  ;;  %v1382_v13 = vld [vmem:[#allocation2 + $0xb8] sm:$0xff] (!%p1579_p0)  ;;  %1413 = vst [vmem:[#allocation9 + $0xb0] sm:$0xff] (!%p1579_p0), %v1381_v39 }
 0x2c8   : > { %1350 = vst [vmem:[#allocation2 + $0xd8] sm:$0xff] %v1318_v36  ;;  %v1280_v27 = vpop.f32.mrb[44].mxu1  ;;  %1414 = vst [vmem:[#allocation9 + $0xb8] sm:$0xff] (!%p1579_p0), %v1382_v13 }
 0x2c9   : > { %v1319_v0 = vadd.f32 %v1280_v27, %v1062_v60  ;;  %v1282_v2 = vpop.f32.mrb[45].mxu1 }
 0x2ca   : > { %v1320_v41 = vadd.f32 %v1282_v2, %v1063_v48  ;;  %1358 = sbr.rel (%p1579_p0) target bundleno = 729 (0x2d9), region = 52  ;;  %v1383_v24 = vld [vmem:[#allocation2 + $0xc0] sm:$0xff] (!%p1579_p0) }
 0x2cb   : > { %1351 = vst [vmem:[#allocation2 + $0xe0] sm:$0xff] %v1319_v0  ;;  %v1384_v49 = vld [vmem:[#allocation2 + $0xc8] sm:$0xff] (!%p1579_p0)  ;;  %1415 = vst [vmem:[#allocation9 + $0xc0] sm:$0xff] (!%p1579_p0), %v1383_v24 }
 0x2cc   : > { %1352 = vst [vmem:[#allocation2 + $0xe8] sm:$0xff] %v1320_v41  ;;  %v1286_v8 = vpop.f32.mrb[46].mxu1  ;;  %1416 = vst [vmem:[#allocation9 + $0xc8] sm:$0xff] (!%p1579_p0), %v1384_v49 }
 0x2cd   : > { %v1321_v31 = vadd.f32 %v1286_v8, %v1064_v4  ;;  %v1288_v53 = vpop.f32.mrb[47].mxu1 }
 0x2ce   : > { %v1322_v12 = vadd.f32 %v1288_v53, %v1065_v20  ;;  %v1385_v58 = vld [vmem:[#allocation2 + $0xd0] sm:$0xff] (!%p1579_p0) }
 0x2cf   : > { %1353 = vst [vmem:[#allocation2 + $0xf0] sm:$0xff] %v1321_v31  ;;  %1417 = vst [vmem:[#allocation9 + $0xd0] sm:$0xff] (!%p1579_p0), %v1385_v58  ;;  %v1386_v35 = vld [vmem:[#allocation2 + $0xd8] sm:$0xff] (!%p1579_p0) }
 0x2d0   : > { %1354 = vst [vmem:[#allocation2 + $0xf8] sm:$0xff] %v1322_v12  ;;  %1418 = vst [vmem:[#allocation9 + $0xd8] sm:$0xff] (!%p1579_p0), %v1386_v35 }
 0x2d2   : > { %v1387_v51 = vld [vmem:[#allocation2 + $0xe0] sm:$0xff] }
 0x2d3   : > { %v1388_v55 = vld [vmem:[#allocation2 + $0xe8] sm:$0xff]  ;;  %1419 = vst [vmem:[#allocation9 + $0xe0] sm:$0xff] %v1387_v51 }
 0x2d4   : > { %1420 = vst [vmem:[#allocation9 + $0xe8] sm:$0xff] %v1388_v55 }
 0x2d6   : > { %v1389_v9 = vld [vmem:[#allocation2 + $0xf0] sm:$0xff] }
 0x2d7   : > { %v1390_v45 = vld [vmem:[#allocation2 + $0xf8] sm:$0xff]  ;;  %1421 = vst [vmem:[#allocation9 + $0xf0] sm:$0xff] %v1389_v9 }
 0x2d8   : > { %1422 = vst [vmem:[#allocation9 + $0xf8] sm:$0xff] %v1390_v45 }
 0x2d9 PF: > { %p1837_p5 = scmp.eq.s32.totalorder %s2319_s30, 1  ;;  %s2208_s15 = smov [#allocation9]  }
 0x2da   : > { %s1433_s6 = sshll.u32 %s2208_s15, 4  ;;  %s1434_s6 = int_to_ptr.vmem [resolvable:$true] %s1433_s6 }
 0x2db   : > { %s2113_s19 = scalar_lea.vmem %s1434_s6, 4096  ;;  %p2120_p13 = scmp.lt.s32.totalorder %s1434_s6, %s1434_s6 }
 0x2dc   : > { %p2114_p1 = scmp.ne.s32.totalorder %s1434_s6, %s2113_s19  ;;  %p2121_p2 = scmp.lt.s32.totalorder %s2113_s19, %s2113_s19 }
 0x2de   : > { %p2115_p4 = pnand %p2114_p1, %p1837_p5  ;;  %p2122_p7 = por %p2121_p2, %p2120_p13 }
 0x2e0   : > { %p2116_p8 = pneg %p2115_p4 }
 0x2e2   : > { %p2123_p9 = pnand %p2122_p7, %p2116_p8 }
 0x2e4   : > { %2126 = shalt.err (!%p2123_p9)
}
 0x2e5   : > { %s2127_s11 = scalar_lea.hbm %s2873_s3, 4096 }
 0x2e6   : > { %p2128_p3 = scmp.ne.s32.totalorder %s2873_s3, %s2127_s11  ;;  %p2133_p10 = scmp.lt.u32.totalorder %s2127_s11, %s2873_s3 }
 0x2e8   : > { %p2129_p11 = pnand %p2128_p3, %p1837_p5 }
 0x2ea   : > { %p2130_p12 = pneg %p2129_p11 }
 0x2ec   : > { %p2135_p6 = pnand %p2133_p10, %p2130_p12 }
 0x2ee   : > { %2138 = shalt.err (!%p2135_p6)
}
 0x2ef   : > { %s2209_s9 = smov 256   ;;  %s2210_s12 = smov 16  }
 0x2f0   : > { %1820 = dma.vmem_to_hbm [thread:$0]  (%p1837_p5), %s1434_s6, 4096, %s2873_s3, [#allocation5], %s2209_s9, %s2209_s9, %s2210_s12  }
 0x2f1   : > { %2172 = dma.done.wait (%p1837_p5), [#allocation5], 4096  }
 0x2f2   : > { %2174 = vsyncadd (%p1837_p5), [#allocation5], 4294963200 }
 0x2f3 PF: > { %s18_s17 = sadd.s32 1, %s2197_s17   ;;  %s2891_s12 = smov %s2181_s13 }
 0x2f4   : > { %p15_p0 = scmp.ge.s32.totalorder %s18_s17, 4   ;;  %s2892_s13 = smov %s2185_s14 }
 0x2f5   : > { %s2893_s14 = smov %s2275_s24  ;;  %s2894_s15 = smov %s2193_s16 }
 0x2f6   : > { %s2895_s16 = smov %s2897_s18  ;;  %17 = sbr.rel (!%p15_p0) target bundleno = 6 (0x6), region = 95 }
 0x2fd   :  { %1449 = vsyncpa [#allocation4], 1 }
 0x2fe   :  { %1451 = vsyncpa [#allocation4 + $0x1], 1 }
 0x2ff   :  { %1452 = vsyncpa [#allocation7], 1 }
 0x300   :  { %1454 = vsyncpa [#allocation7 + $0x1], 1 }
 0x301   :  { %1455 = vsyncpa [#allocation5], 1 }
 0x302   :  { %1457 = vsyncpa [#allocation5 + $0x1], 1 }

</bundles_post_ra>
